<compile_context>
chip_gen: v7x
topology: tpu7x:2x2x1
jax: 0.10.0
libtpu: 0.0.40
codegen_flags: <defaults>
</compile_context>

<pallas_src>
import functools

import jax
import jax.numpy as jnp
from jax.experimental import pallas as pl
from jax.experimental.pallas import tpu as pltpu

# ---- model hyper-parameters (PyTorch module defaults) ----------------------
K_TEMPORAL = 40          # cnn_temporal_kernels
KT = 13                  # cnn_temporal_kernelsize[0]
K_SPATIAL = 40           # cnn_spatial_kernels
POOL = 38                # cnn_poolsize[0]
POOL_STRIDE = 8          # cnn_poolstride[0]
H1 = 12                  # dense_layer_1_neuron
H2 = 8                   # dense_layer_2_neuron
NOUT = 4                 # dense_out_neuron
OUT_PAD = 128            # lane-dense padded class width for the output store
NEG_BIG = -1e30          # padded-class bias (exp underflows to exactly 0)
MAX_NORM = 0.25          # dense_max_norm
BN_EPS = 1e-5

B_TILE_MAX = 64          # samples per grid step (multiple of 8)


# ---- Pallas kernel: one batch tile per grid step ----------------------------
def cnn_forward_kernel(x_ref, wconv_ref, bconv_ref,
                       wf1_ref, bf1_ref, wf2_ref, bf2_ref, wf3_ref, bf3_ref,
                       o_ref, *, n_pool):
    b_tile, T_pad, C = x_ref.shape
    Tp = T_pad - (KT - 1)                       # multiple of 8 by construction

    x = x_ref[...]                              # (b_tile, T_pad, C)

    # im2col: patch column index = dt*C + c  (matches fused weight layout)
    patches = jnp.concatenate(
        [x[:, dt:dt + Tp, :] for dt in range(KT)], axis=2)   # (b_tile, Tp, KT*C)
    patches = patches.reshape(b_tile * Tp, KT * C)

    # Entire conv stack (conv_0 + BN0 + conv_1 + BN1) folded into ONE matmul.
    y2 = jnp.dot(patches, wconv_ref[...],
                 preferred_element_type=jnp.float32)         # (b_tile*Tp, K_SPATIAL)
    y2 = y2 + bconv_ref[...]
    y2 = y2.reshape(b_tile, Tp, K_SPATIAL)

    # Max-pool over time; flatten in (pool_step, spatial_kernel) order via a
    # lane concatenation (matches torch Flatten of (B, n_pool, 1, K_SPATIAL)).
    pooled = [jnp.max(y2[:, i * POOL_STRIDE:i * POOL_STRIDE + POOL, :], axis=1)
              for i in range(n_pool)]                        # each (b_tile, K_SPATIAL)
    flat = jnp.concatenate(pooled, axis=1)                   # (b_tile, n_pool*K_SPATIAL)

    # Dense head, batched over the tile (real MXU matmuls, M = b_tile).
    h1 = jnp.dot(flat, wf1_ref[...],
                 preferred_element_type=jnp.float32) + bf1_ref[...]
    h1 = jnp.where(h1 > 0, h1, jnp.exp(jnp.minimum(h1, 0.0)) - 1.0)   # ELU

    h2 = jnp.dot(h1, wf2_ref[...],
                 preferred_element_type=jnp.float32) + bf2_ref[...]
    h2 = jnp.where(h2 > 0, h2, jnp.exp(jnp.minimum(h2, 0.0)) - 1.0)   # ELU

    # fc_out at lane-dense width OUT_PAD (padded cols: weight 0, bias -1e30).
    logits = jnp.dot(h2, wf3_ref[...],
                     preferred_element_type=jnp.float32) + bf3_ref[...]

    # LogSoftmax over classes; padded lanes contribute exp(-1e30 - m) == 0.
    m = jnp.max(logits, axis=-1, keepdims=True)
    lse = jnp.log(jnp.sum(jnp.exp(logits - m), axis=-1, keepdims=True)) + m
    o_ref[...] = logits - lse                                 # full-width unmasked store


# ---- weight folding (eval-mode BN + both convs are linear -> fuse) ----------
def _fold_params(p, n_pool):
    C = p['w1'].shape[0]
    hi = jax.lax.Precision.HIGHEST
    bn0s, bn0b = p['bn0s'][0], p['bn0b'][0]          # (K_TEMPORAL,)
    bn1s, bn1b = p['bn1s'][0], p['bn1b'][0]          # (K_SPATIAL,)

    w0s = p['w0'] * bn0s[None, :]                    # (KT, K_TEMPORAL)
    wconv = jnp.einsum('dk,ckj->dcj', w0s, p['w1'], precision=hi)
    wconv = (wconv * bn1s[None, None, :]).reshape(KT * C, K_SPATIAL)

    bias0 = p['b0'][0] * bn0s + bn0b                 # (K_TEMPORAL,)
    bconv = jnp.einsum('k,ckj->j', bias0, p['w1'], precision=hi) * bn1s + bn1b

    wf1 = p['wf1'].reshape(n_pool * K_SPATIAL, H1)

    # Lane-dense fc_out: pad class dim to OUT_PAD.  Padded columns get weight 0
    # and bias -1e30 so they never influence the log-softmax of real classes.
    wf3 = jnp.pad(p['wf3'], ((0, 0), (0, OUT_PAD - NOUT)))
    bf3 = jnp.pad(p['bf3'], ((0, 0), (0, OUT_PAD - NOUT)), constant_values=NEG_BIG)

    return (wconv, bconv[None, :], wf1, p['bf1'],
            p['wf2'], p['bf2'], wf3, bf3)


def _replicated_spec(arr):
    nd = arr.ndim
    return pl.BlockSpec(arr.shape, lambda i, nd=nd: (0,) * nd)


# ---- wrapper -----------------------------------------------------------------
def cnn_forward(x, p, b_tile_max=B_TILE_MAX):
    B, T, C, _ = x.shape
    Tp = T - (KT - 1)
    n_pool = (Tp - POOL) // POOL_STRIDE + 1

    # Pad time so the valid-conv length is sublane-aligned (multiple of 8).
    Tp_pad = -(-Tp // 8) * 8
    T_pad = Tp_pad + (KT - 1)

    x3 = x[..., 0].astype(jnp.float32)               # (B, T, C)
    if T_pad > T:
        x3 = jnp.pad(x3, ((0, 0), (0, T_pad - T), (0, 0)))

    # Batch tiling: whole batch in one step when small, else tiles of b_tile_max.
    if B <= b_tile_max:
        b_tile, B_pad = B, B
    else:
        b_tile = b_tile_max
        B_pad = -(-B // b_tile) * b_tile
        if B_pad > B:
            x3 = jnp.pad(x3, ((0, B_pad - B), (0, 0), (0, 0)))

    weights = _fold_params(p, n_pool)

    in_specs = [pl.BlockSpec((b_tile, T_pad, C), lambda i: (i, 0, 0))]
    in_specs += [_replicated_spec(w) for w in weights]

    out = pl.pallas_call(
        functools.partial(cnn_forward_kernel, n_pool=n_pool),
        out_shape=jax.ShapeDtypeStruct((B_pad, OUT_PAD), jnp.float32),
        grid=(B_pad // b_tile,),
        in_specs=in_specs,
        out_specs=pl.BlockSpec((b_tile, OUT_PAD), lambda i: (i, 0)),
        compiler_params=pltpu.CompilerParams(
            dimension_semantics=("parallel",)),
    )(x3, *weights)
    return out[:B, :NOUT]                            # (B, NOUT)


# ---- deterministic parameter initialization ---------------------------------
def init_params(key, T, C):
    Tp = T - (KT - 1)
    n_pool = (Tp - POOL) // POOL_STRIDE + 1
    ks = jax.random.split(key, 17)

    def u(k, shape, scale):
        return jax.random.uniform(k, shape, jnp.float32, -1.0, 1.0) * scale

    w0 = u(ks[0], (KT, K_TEMPORAL), 0.3)
    b0 = u(ks[1], (1, K_TEMPORAL), 0.1)
    # BatchNorm 0 (eval mode) folded into scale/shift
    g0 = 1.0 + u(ks[2], (1, K_TEMPORAL), 0.1)
    be0 = u(ks[3], (1, K_TEMPORAL), 0.1)
    m0 = u(ks[4], (1, K_TEMPORAL), 0.1)
    v0 = 1.0 + 0.5 * u(ks[5], (1, K_TEMPORAL), 0.5)
    bn0s = g0 / jnp.sqrt(v0 + BN_EPS)
    bn0b = be0 - m0 * bn0s

    w1 = u(ks[6], (C, K_TEMPORAL, K_SPATIAL), 0.2)
    # BatchNorm 1 folded
    g1 = 1.0 + u(ks[7], (1, K_SPATIAL), 0.1)
    be1 = u(ks[8], (1, K_SPATIAL), 0.1)
    m1 = u(ks[9], (1, K_SPATIAL), 0.1)
    v1 = 1.0 + 0.5 * u(ks[10], (1, K_SPATIAL), 0.5)
    bn1s = g1 / jnp.sqrt(v1 + BN_EPS)
    bn1b = be1 - m1 * bn1s

    wf1 = u(ks[11], (n_pool, K_SPATIAL, H1), 0.2)    # fc_1, rows grouped by pool step
    bf1 = u(ks[12], (1, H1), 0.1)
    wf2 = u(ks[13], (H1, H2), 0.3)
    bf2 = u(ks[14], (1, H2), 0.1)
    wf3 = u(ks[15], (H2, NOUT), 0.5)
    # max_norm = 0.25 renorm per output neuron (torch.renorm on weight rows)
    norms = jnp.linalg.norm(wf3, axis=0, keepdims=True)
    wf3 = wf3 * jnp.minimum(1.0, MAX_NORM / jnp.maximum(norms, 1e-12))
    bf3 = u(ks[16], (1, NOUT), 0.1)

    return dict(w0=w0, b0=b0, bn0s=bn0s, bn0b=bn0b,
                w1=w1, bn1s=bn1s, bn1b=bn1b,
                wf1=wf1, bf1=bf1, wf2=wf2, bf2=bf2, wf3=wf3, bf3=bf3)


# ---- pure-JAX reference (mirrors the original un-fused pipeline) -------------
def reference_forward(x, p):
    B, T, C, _ = x.shape
    Tp = T - (KT - 1)
    n_pool = (Tp - POOL) // POOL_STRIDE + 1
    hi = jax.lax.Precision.HIGHEST
    xs = x[..., 0].astype(jnp.float32)               # (B, T, C)

    yc = jnp.zeros((B, Tp, C, K_TEMPORAL), jnp.float32)
    for dt in range(KT):
        yc = yc + xs[:, dt:dt + Tp, :, None] * p['w0'][dt][None, None, None, :]
    yc = yc + p['b0'][0]
    yc = yc * p['bn0s'][0] + p['bn0b'][0]
    y2 = jnp.einsum('btck,ckj->btj', yc, p['w1'], precision=hi)
    y2 = y2 * p['bn1s'][0] + p['bn1b'][0]
    pooled = jnp.stack(
        [jnp.max(y2[:, i * POOL_STRIDE:i * POOL_STRIDE + POOL, :], axis=1)
         for i in range(n_pool)], axis=1)            # (B, n_pool, K_SPATIAL)
    h1 = jnp.einsum('bik,ikj->bj', pooled, p['wf1'], precision=hi) + p['bf1'][0]
    h1 = jnp.where(h1 > 0, h1, jnp.exp(jnp.minimum(h1, 0.0)) - 1.0)
    h2 = jnp.dot(h1, p['wf2'], precision=hi) + p['bf2'][0]
    h2 = jnp.where(h2 > 0, h2, jnp.exp(jnp.minimum(h2, 0.0)) - 1.0)
    logits = jnp.dot(h2, p['wf3'], precision=hi) + p['bf3'][0]
    return jax.nn.log_softmax(logits, axis=-1)


if __name__ == "__main__":
    key = jax.random.PRNGKey(0)
    k_x, k_p = jax.random.split(key)

    # small shapes consistent with the module: (batch, time, EEG channel, 1)
    B, T, C = 2, 66, 4                      # Tp=54 -> 3 pool frames, 3*40=120 flat
    x = jax.random.uniform(k_x, (B, T, C, 1), jnp.float32)
    params = init_params(k_p, T, C)

    fwd = jax.jit(cnn_forward)
    out = fwd(x, params)
    jax.block_until_ready(out)

    ref = reference_forward(x, params)
    assert out.shape == (B, NOUT)
    # Folding conv+BN into one matmul changes f32 summation order slightly.
    assert jnp.allclose(out, ref, rtol=1e-3, atol=1e-3), "mismatch vs JAX reference"

    print("KERNEL_OK")
</pallas_src>

<mosaic_0001>
module attributes {stable_mosaic.version = 11 : i64} {
  func.func @cnn_forward_kernel(%arg0: i32, %arg1: memref<2x68x4xf32, #tpu.memory_space<vmem>>, %arg2: memref<52x40xf32, #tpu.memory_space<vmem>>, %arg3: memref<1x40xf32, #tpu.memory_space<vmem>>, %arg4: memref<120x12xf32, #tpu.memory_space<vmem>>, %arg5: memref<1x12xf32, #tpu.memory_space<vmem>>, %arg6: memref<12x8xf32, #tpu.memory_space<vmem>>, %arg7: memref<1x8xf32, #tpu.memory_space<vmem>>, %arg8: memref<8x128xf32, #tpu.memory_space<vmem>>, %arg9: memref<1x128xf32, #tpu.memory_space<vmem>>, %arg10: memref<2x128xf32, #tpu.memory_space<vmem>>) attributes {dimension_semantics = [#tpu.dimension_semantics<parallel>], iteration_bounds = array<i64: 1>, scalar_prefetch = 0 : i64, scratch_operands = 0 : i64, tpu.core_type = #tpu.core_type<tc>, window_params = [{transform_indices = @transform_0, window_bounds = array<i64: 2, 68, 4>}, {pipeline_mode = #tpu.pipeline_mode<synchronous>, transform_indices = @transform_1, window_bounds = array<i64: 52, 40>}, {pipeline_mode = #tpu.pipeline_mode<synchronous>, transform_indices = @transform_2, window_bounds = array<i64: 1, 40>}, {pipeline_mode = #tpu.pipeline_mode<synchronous>, transform_indices = @transform_3, window_bounds = array<i64: 120, 12>}, {pipeline_mode = #tpu.pipeline_mode<synchronous>, transform_indices = @transform_4, window_bounds = array<i64: 1, 12>}, {pipeline_mode = #tpu.pipeline_mode<synchronous>, transform_indices = @transform_5, window_bounds = array<i64: 12, 8>}, {pipeline_mode = #tpu.pipeline_mode<synchronous>, transform_indices = @transform_6, window_bounds = array<i64: 1, 8>}, {pipeline_mode = #tpu.pipeline_mode<synchronous>, transform_indices = @transform_7, window_bounds = array<i64: 8, 128>}, {pipeline_mode = #tpu.pipeline_mode<synchronous>, transform_indices = @transform_8, window_bounds = array<i64: 1, 128>}, {transform_indices = @transform_9, window_bounds = array<i64: 2, 128>}]} {
    %c0 = arith.constant 0 : index
    %c0_0 = arith.constant 0 : index
    %c0_1 = arith.constant 0 : index
    %0 = vector.load %arg1[%c0, %c0_0, %c0_1] : memref<2x68x4xf32, #tpu.memory_space<vmem>>, vector<2x68x4xf32>
    %1 = vector.extract_strided_slice %0 {offsets = [0, 0, 0], sizes = [2, 56, 4], strides = [1, 1, 1]} : vector<2x68x4xf32> to vector<2x56x4xf32>
    %2 = vector.extract_strided_slice %0 {offsets = [0, 1, 0], sizes = [2, 56, 4], strides = [1, 1, 1]} : vector<2x68x4xf32> to vector<2x56x4xf32>
    %3 = vector.extract_strided_slice %0 {offsets = [0, 2, 0], sizes = [2, 56, 4], strides = [1, 1, 1]} : vector<2x68x4xf32> to vector<2x56x4xf32>
    %4 = vector.extract_strided_slice %0 {offsets = [0, 3, 0], sizes = [2, 56, 4], strides = [1, 1, 1]} : vector<2x68x4xf32> to vector<2x56x4xf32>
    %5 = vector.extract_strided_slice %0 {offsets = [0, 4, 0], sizes = [2, 56, 4], strides = [1, 1, 1]} : vector<2x68x4xf32> to vector<2x56x4xf32>
    %6 = vector.extract_strided_slice %0 {offsets = [0, 5, 0], sizes = [2, 56, 4], strides = [1, 1, 1]} : vector<2x68x4xf32> to vector<2x56x4xf32>
    %7 = vector.extract_strided_slice %0 {offsets = [0, 6, 0], sizes = [2, 56, 4], strides = [1, 1, 1]} : vector<2x68x4xf32> to vector<2x56x4xf32>
    %8 = vector.extract_strided_slice %0 {offsets = [0, 7, 0], sizes = [2, 56, 4], strides = [1, 1, 1]} : vector<2x68x4xf32> to vector<2x56x4xf32>
    %9 = vector.extract_strided_slice %0 {offsets = [0, 8, 0], sizes = [2, 56, 4], strides = [1, 1, 1]} : vector<2x68x4xf32> to vector<2x56x4xf32>
    %10 = vector.extract_strided_slice %0 {offsets = [0, 9, 0], sizes = [2, 56, 4], strides = [1, 1, 1]} : vector<2x68x4xf32> to vector<2x56x4xf32>
    %11 = vector.extract_strided_slice %0 {offsets = [0, 10, 0], sizes = [2, 56, 4], strides = [1, 1, 1]} : vector<2x68x4xf32> to vector<2x56x4xf32>
    %12 = vector.extract_strided_slice %0 {offsets = [0, 11, 0], sizes = [2, 56, 4], strides = [1, 1, 1]} : vector<2x68x4xf32> to vector<2x56x4xf32>
    %13 = vector.extract_strided_slice %0 {offsets = [0, 12, 0], sizes = [2, 56, 4], strides = [1, 1, 1]} : vector<2x68x4xf32> to vector<2x56x4xf32>
    %14 = tpu.concatenate %1, %2, %3, %4, %5, %6, %7, %8, %9, %10, %11, %12, %13 in 2 : vector<2x56x4xf32>, vector<2x56x4xf32>, vector<2x56x4xf32>, vector<2x56x4xf32>, vector<2x56x4xf32>, vector<2x56x4xf32>, vector<2x56x4xf32>, vector<2x56x4xf32>, vector<2x56x4xf32>, vector<2x56x4xf32>, vector<2x56x4xf32>, vector<2x56x4xf32>, vector<2x56x4xf32> -> vector<2x56x52xf32>
    %15 = vector.shape_cast %14 : vector<2x56x52xf32> to vector<112x52xf32>
    %c0_2 = arith.constant 0 : index
    %c0_3 = arith.constant 0 : index
    %16 = vector.load %arg2[%c0_2, %c0_3] : memref<52x40xf32, #tpu.memory_space<vmem>>, vector<52x40xf32>
    %cst = arith.constant dense<0.000000e+00> : vector<112x40xf32>
    %17 = tpu.matmul %15, %16, %cst {dimension_numbers = #tpu.dot_dimension_numbers<[1], [0], [0], [1], [0, 0, 1, 1], [], []>} : vector<112x52xf32>, vector<52x40xf32>, vector<112x40xf32> -> vector<112x40xf32>
    %c0_4 = arith.constant 0 : index
    %c0_5 = arith.constant 0 : index
    %18 = vector.load %arg3[%c0_4, %c0_5] : memref<1x40xf32, #tpu.memory_space<vmem>>, vector<1x40xf32>
    %19 = vector.broadcast %18 : vector<1x40xf32> to vector<112x40xf32>
    %20 = arith.addf %17, %19 : vector<112x40xf32>
    %21 = vector.shape_cast %20 : vector<112x40xf32> to vector<2x56x40xf32>
    %22 = vector.extract_strided_slice %21 {offsets = [0, 0, 0], sizes = [2, 38, 40], strides = [1, 1, 1]} : vector<2x56x40xf32> to vector<2x38x40xf32>
    %cst_6 = arith.constant dense<0xFF800000> : vector<2x40xf32>
    %23 = vector.multi_reduction <maximumf>, %22, %cst_6 [1] : vector<2x38x40xf32> to vector<2x40xf32>
    %24 = vector.extract_strided_slice %21 {offsets = [0, 8, 0], sizes = [2, 38, 40], strides = [1, 1, 1]} : vector<2x56x40xf32> to vector<2x38x40xf32>
    %cst_7 = arith.constant dense<0xFF800000> : vector<2x40xf32>
    %25 = vector.multi_reduction <maximumf>, %24, %cst_7 [1] : vector<2x38x40xf32> to vector<2x40xf32>
    %26 = vector.extract_strided_slice %21 {offsets = [0, 16, 0], sizes = [2, 38, 40], strides = [1, 1, 1]} : vector<2x56x40xf32> to vector<2x38x40xf32>
    %cst_8 = arith.constant dense<0xFF800000> : vector<2x40xf32>
    %27 = vector.multi_reduction <maximumf>, %26, %cst_8 [1] : vector<2x38x40xf32> to vector<2x40xf32>
    %28 = tpu.concatenate %23, %25, %27 in 1 : vector<2x40xf32>, vector<2x40xf32>, vector<2x40xf32> -> vector<2x120xf32>
    %c0_9 = arith.constant 0 : index
    %c0_10 = arith.constant 0 : index
    %29 = vector.load %arg4[%c0_9, %c0_10] : memref<120x12xf32, #tpu.memory_space<vmem>>, vector<120x12xf32>
    %cst_11 = arith.constant dense<0.000000e+00> : vector<2x12xf32>
    %30 = tpu.matmul %28, %29, %cst_11 {dimension_numbers = #tpu.dot_dimension_numbers<[1], [0], [0], [1], [0, 0, 1, 1], [], []>} : vector<2x120xf32>, vector<120x12xf32>, vector<2x12xf32> -> vector<2x12xf32>
    %c0_12 = arith.constant 0 : index
    %c0_13 = arith.constant 0 : index
    %31 = vector.load %arg5[%c0_12, %c0_13] : memref<1x12xf32, #tpu.memory_space<vmem>>, vector<1x12xf32>
    %32 = vector.broadcast %31 : vector<1x12xf32> to vector<2x12xf32>
    %33 = arith.addf %30, %32 : vector<2x12xf32>
    %cst_14 = arith.constant 0.000000e+00 : f32
    %34 = vector.broadcast %cst_14 : f32 to vector<2x12xf32>
    %35 = arith.cmpf ogt, %33, %34 : vector<2x12xf32>
    %cst_15 = arith.constant 0.000000e+00 : f32
    %36 = vector.broadcast %cst_15 : f32 to vector<2x12xf32>
    %37 = arith.minimumf %33, %36 : vector<2x12xf32>
    %38 = math.exp %37 : vector<2x12xf32>
    %cst_16 = arith.constant 1.000000e+00 : f32
    %39 = vector.broadcast %cst_16 : f32 to vector<2x12xf32>
    %40 = arith.subf %38, %39 : vector<2x12xf32>
    %41 = arith.select %35, %33, %40 : vector<2x12xi1>, vector<2x12xf32>
    %c0_17 = arith.constant 0 : index
    %c0_18 = arith.constant 0 : index
    %42 = vector.load %arg6[%c0_17, %c0_18] : memref<12x8xf32, #tpu.memory_space<vmem>>, vector<12x8xf32>
    %cst_19 = arith.constant dense<0.000000e+00> : vector<2x8xf32>
    %43 = tpu.matmul %41, %42, %cst_19 {dimension_numbers = #tpu.dot_dimension_numbers<[1], [0], [0], [1], [0, 0, 1, 1], [], []>} : vector<2x12xf32>, vector<12x8xf32>, vector<2x8xf32> -> vector<2x8xf32>
    %c0_20 = arith.constant 0 : index
    %c0_21 = arith.constant 0 : index
    %44 = vector.load %arg7[%c0_20, %c0_21] : memref<1x8xf32, #tpu.memory_space<vmem>>, vector<1x8xf32>
    %45 = vector.broadcast %44 : vector<1x8xf32> to vector<2x8xf32>
    %46 = arith.addf %43, %45 : vector<2x8xf32>
    %cst_22 = arith.constant 0.000000e+00 : f32
    %47 = vector.broadcast %cst_22 : f32 to vector<2x8xf32>
    %48 = arith.cmpf ogt, %46, %47 : vector<2x8xf32>
    %cst_23 = arith.constant 0.000000e+00 : f32
    %49 = vector.broadcast %cst_23 : f32 to vector<2x8xf32>
    %50 = arith.minimumf %46, %49 : vector<2x8xf32>
    %51 = math.exp %50 : vector<2x8xf32>
    %cst_24 = arith.constant 1.000000e+00 : f32
    %52 = vector.broadcast %cst_24 : f32 to vector<2x8xf32>
    %53 = arith.subf %51, %52 : vector<2x8xf32>
    %54 = arith.select %48, %46, %53 : vector<2x8xi1>, vector<2x8xf32>
    %c0_25 = arith.constant 0 : index
    %c0_26 = arith.constant 0 : index
    %55 = vector.load %arg8[%c0_25, %c0_26] : memref<8x128xf32, #tpu.memory_space<vmem>>, vector<8x128xf32>
    %cst_27 = arith.constant dense<0.000000e+00> : vector<2x128xf32>
    %56 = tpu.matmul %54, %55, %cst_27 {dimension_numbers = #tpu.dot_dimension_numbers<[1], [0], [0], [1], [0, 0, 1, 1], [], []>} : vector<2x8xf32>, vector<8x128xf32>, vector<2x128xf32> -> vector<2x128xf32>
    %c0_28 = arith.constant 0 : index
    %c0_29 = arith.constant 0 : index
    %57 = vector.load %arg9[%c0_28, %c0_29] : memref<1x128xf32, #tpu.memory_space<vmem>>, vector<1x128xf32>
    %58 = vector.broadcast %57 : vector<1x128xf32> to vector<2x128xf32>
    %59 = arith.addf %56, %58 : vector<2x128xf32>
    %cst_30 = arith.constant dense<0xFF800000> : vector<2xf32>
    %60 = vector.multi_reduction <maximumf>, %59, %cst_30 [1] : vector<2x128xf32> to vector<2xf32>
    %61 = vector.shape_cast %60 : vector<2xf32> to vector<2x1xf32>
    %62 = vector.broadcast %61 : vector<2x1xf32> to vector<2x128xf32>
    %63 = arith.subf %59, %62 : vector<2x128xf32>
    %64 = math.exp %63 : vector<2x128xf32>
    %cst_31 = arith.constant dense<0.000000e+00> : vector<2xf32>
    %65 = vector.multi_reduction <add>, %64, %cst_31 [1] : vector<2x128xf32> to vector<2xf32>
    %66 = vector.shape_cast %65 : vector<2xf32> to vector<2x1xf32>
    %67 = math.log %66 : vector<2x1xf32>
    %68 = arith.addf %67, %61 : vector<2x1xf32>
    %69 = vector.broadcast %68 : vector<2x1xf32> to vector<2x128xf32>
    %70 = arith.subf %59, %69 : vector<2x128xf32>
    %c0_32 = arith.constant 0 : index
    %c0_33 = arith.constant 0 : index
    %71 = vector.load %arg10[%c0_32, %c0_33] : memref<2x128xf32, #tpu.memory_space<vmem>>, vector<2x128xf32>
    tpu.vector_store %arg10[%c0_32, %c0_33], %70 {strides = array<i32>} : memref<2x128xf32, #tpu.memory_space<vmem>>, vector<2x128xf32>,
    return
  }
  func.func @transform_0(%arg0: i32) -> (i32, i32, i32) {
    %c0_i32 = arith.constant 0 : i32
    %c0_i32_0 = arith.constant 0 : i32
    %c0_i32_1 = arith.constant 0 : i32
    return %arg0, %c0_i32, %c0_i32_0 : i32, i32, i32
  }
  func.func @transform_1(%arg0: i32) -> (i32, i32) {
    %c0_i32 = arith.constant 0 : i32
    %c0_i32_0 = arith.constant 0 : i32
    %c0_i32_1 = arith.constant 0 : i32
    return %c0_i32, %c0_i32_0 : i32, i32
  }
  func.func @transform_2(%arg0: i32) -> (i32, i32) {
    %c0_i32 = arith.constant 0 : i32
    %c0_i32_0 = arith.constant 0 : i32
    %c0_i32_1 = arith.constant 0 : i32
    return %c0_i32, %c0_i32_0 : i32, i32
  }
  func.func @transform_3(%arg0: i32) -> (i32, i32) {
    %c0_i32 = arith.constant 0 : i32
    %c0_i32_0 = arith.constant 0 : i32
    %c0_i32_1 = arith.constant 0 : i32
    return %c0_i32, %c0_i32_0 : i32, i32
  }
  func.func @transform_4(%arg0: i32) -> (i32, i32) {
    %c0_i32 = arith.constant 0 : i32
    %c0_i32_0 = arith.constant 0 : i32
    %c0_i32_1 = arith.constant 0 : i32
    return %c0_i32, %c0_i32_0 : i32, i32
  }
  func.func @transform_5(%arg0: i32) -> (i32, i32) {
    %c0_i32 = arith.constant 0 : i32
    %c0_i32_0 = arith.constant 0 : i32
    %c0_i32_1 = arith.constant 0 : i32
    return %c0_i32, %c0_i32_0 : i32, i32
  }
  func.func @transform_6(%arg0: i32) -> (i32, i32) {
    %c0_i32 = arith.constant 0 : i32
    %c0_i32_0 = arith.constant 0 : i32
    %c0_i32_1 = arith.constant 0 : i32
    return %c0_i32, %c0_i32_0 : i32, i32
  }
  func.func @transform_7(%arg0: i32) -> (i32, i32) {
    %c0_i32 = arith.constant 0 : i32
    %c0_i32_0 = arith.constant 0 : i32
    %c0_i32_1 = arith.constant 0 : i32
    return %c0_i32, %c0_i32_0 : i32, i32
  }
  func.func @transform_8(%arg0: i32) -> (i32, i32) {
    %c0_i32 = arith.constant 0 : i32
    %c0_i32_0 = arith.constant 0 : i32
    %c0_i32_1 = arith.constant 0 : i32
    return %c0_i32, %c0_i32_0 : i32, i32
  }
  func.func @transform_9(%arg0: i32) -> (i32, i32) {
    %c0_i32 = arith.constant 0 : i32
    %c0_i32_0 = arith.constant 0 : i32
    return %arg0, %c0_i32 : i32, i32
  }
}

</mosaic_0001>

<bundles_post_ra>
// kernel: cnn_forward.1
= control target key start
LH: loop header
LB: loop body
LE: loop exit
PB: predicated region body
PF: predicated region fallthrough
CT: control target
= control target key end

     0   :  { %vm140_vm0 = vcmask 1045504   ;;  %vm3333_vm1 = vcmask 1046528   ;;  %s1815_s15 = smov 8   ;;  %s1816_s16 = smov 4   ;;  %vm3339_vm2 = vcmask 1044480   ;;  %s3313_s0 = inlined_call_operand.vmem [shape: f32[2,68,4], index: 0, kind: input, shape index: {}]   ;;  %s3314_s1 = inlined_call_operand.vmem [shape: f32[52,40], index: 1, kind: input, shape index: {}]   ;;  %s3315_s2 = inlined_call_operand.vmem [shape: f32[1,40], index: 2, kind: input, shape index: {}]   ;;  %s3316_s3 = inlined_call_operand.vmem [shape: f32[120,12], index: 3, kind: input, shape index: {}]   ;;  %s3317_s4 = inlined_call_operand.vmem [shape: f32[1,12], index: 4, kind: input, shape index: {}]   ;;  %s3318_s5 = inlined_call_operand.vmem [shape: f32[12,8], index: 5, kind: input, shape index: {}]   ;;  %s3319_s6 = inlined_call_operand.vmem [shape: f32[1,8], index: 6, kind: input, shape index: {}]   ;;  %s3320_s7 = inlined_call_operand.vmem [shape: f32[8,128], index: 7, kind: input, shape index: {}]   ;;  %s3321_s8 = inlined_call_operand.vmem [shape: f32[1,128], index: 8, kind: input, shape index: {}]   ;;  %s3322_s9 = inlined_call_operand.hbm [shape: f32[2,128], index: 9, kind: output, shape index: {}]  }
   0x1   :  { %v1886_v0 = vld [vmem:[%s3313_s0] sm:$0xff]  ;;  %v1891_v1 = vld [vmem:[%s3313_s0 + $0x8] sm:$0xff]  ;;  %v1900_v6 = vld [vmem:[%s3313_s0 + $0x10] sm:$0xff] }
   0x2   :  { %v141_v2 = vrot.slane %v1886_v0, 2  ;;  %v142_v3 = vrot.slane %v1891_v1, 2  ;;  %v68_v4 = vrot.slane %v1886_v0, 1  ;;  %v69_v5 = vrot.slane %v1891_v1, 1  ;;  %v1920_v16 = vld [vmem:[%s3313_s0 + $0x18] sm:$0xff] }
   0x3   :  { %v144_v7 = vrot.slane %v1900_v6, 2  ;;  %v71_v8 = vrot.slane %v1900_v6, 1  ;;  %v215_v11 = vrot.slane %v1891_v1, 3  ;;  %v217_v14 = vrot.slane %v1900_v6, 3 }
   0x4   :  { %v143_v9 = vsel %vm140_vm0, %v141_v2, %v142_v3  ;;  %v70_v10 = vsel %vm3333_vm1, %v68_v4, %v69_v5  ;;  %v214_v15 = vrot.slane %v1886_v0, 3 }
   0x5   :  { %171 = vrot.lane.b32.xlu1 %v143_v9, %s1815_s15  ;;  %98 = vrot.lane.b32.xlu0 %v70_v10, %s1816_s16  ;;  %v1910_v12 = vsel %vm140_vm0, %v142_v3, %v144_v7  ;;  %v1913_v13 = vsel %vm3333_vm1, %v69_v5, %v71_v8 }
   0x6   :  { %14 = vsyncpa [#allocation3], 0  ;;  %v73_v17 = vrot.slane %v1920_v16, 1  ;;  %v1928_v18 = vsel %vm3339_vm2, %v215_v11, %v217_v14  ;;  %v216_v19 = vsel %vm3339_vm2, %v214_v15, %v215_v11  ;;  %v287_v20 = vrot.slane %v1886_v0, 4  ;;  %s1817_s19 = smov 12   ;;  %v1946_v27 = vld [vmem:[%s3313_s0 + $0x20] sm:$0xff] }
   0x7   :  { %v288_v21 = vrot.slane %v1891_v1, 4  ;;  %vm3334_vm3 = vcmask 1043456   ;;  %v360_v24 = vrot.slane %v1886_v0, 5  ;;  %v361_v25 = vrot.slane %v1891_v1, 5  ;;  %s1818_s22 = smov 16   ;;  %s1819_s23 = smov 20  }
   0x8   :  { %v1937_v22 = vsel %vm3333_vm1, %v71_v8, %v73_v17  ;;  %v290_v26 = vrot.slane %v1900_v6, 4  ;;  %vm3335_vm4 = vcmask 1042432   ;;  %v146_v30 = vrot.slane %v1920_v16, 2  ;;  %s1820_s24 = smov 24   ;;  %s1821_s25 = smov 28   ;;  %v2008_v53 = vld [vmem:[%s3313_s0 + $0x28] sm:$0xff] }
   0x9   :  { %173 = vrot.lane.b32.xlu1 %v1910_v12, %s1815_s15  ;;  %100 = vrot.lane.b32.xlu0 %v1913_v13, %s1816_s16  ;;  %v289_v23 = vsel %vm3334_vm3, %v287_v20, %v288_v21  ;;  %v362_v28 = vsel %vm3335_vm4, %v360_v24, %v361_v25  ;;  %v75_v31 = vrot.slane %v1946_v27, 1  ;;  %v433_v32 = vrot.slane %v1886_v0, 6  ;;  %s1822_s28 = smov 32   ;;  %v2030_v60 = vld [vmem:[%s3313_s0 + $0x30] sm:$0xff]  ;;  %s1823_s10 = smov 36  }
   0xa   :  { %v1953_v29 = vsel %vm3334_vm3, %v288_v21, %v290_v26  ;;  %v1962_v33 = vsel %vm140_vm0, %v144_v7, %v146_v30  ;;  %v434_v35 = vrot.slane %v1891_v1, 6  ;;  %v363_v36 = vrot.slane %v1900_v6, 5  ;;  %s1824_s11 = smov 40   ;;  %v987_v21 = vld [vmem:[%s3314_s1 + $0x8] sm:$0xff]  ;;  %s1825_s18 = smov 44  }
   0xb   :  { %v1965_v34 = vsel %vm3333_vm1, %v73_v17, %v75_v31  ;;  %vm3338_vm5 = vcmask 1041408   ;;  %v219_v39 = vrot.slane %v1920_v16, 3  ;;  %v148_v40 = vrot.slane %v1946_v27, 2  ;;  %s1826_s26 = smov 48  }
   0xc   :  { %v435_v37 = vsel %vm3338_vm5, %v433_v32, %v434_v35  ;;  %v364_v38 = vsel %vm3335_vm4, %v361_v25, %v363_v36  ;;  %v506_v41 = vrot.slane %v1886_v0, 7  ;;  %v507_v44 = vrot.slane %v1891_v1, 7 }
   0xd   :  { %246 = vrot.lane.b32.xlu1 %v1928_v18, %s1817_s19  ;;  %244 = vrot.lane.b32.xlu0 %v216_v19, %s1817_s19  ;;  %v1981_v42 = vsel %vm3339_vm2, %v217_v14, %v219_v39  ;;  %v1984_v43 = vsel %vm140_vm0, %v146_v30, %v148_v40  ;;  %v436_v45 = vrot.slane %v1900_v6, 6  ;;  %vm3336_vm6 = vcmask 1040384  }
   0xe   :  { %v508_v46 = vsel %vm3336_vm6, %v506_v41, %v507_v44  ;;  %v292_v48 = vrot.slane %v1920_v16, 4  ;;  %v221_v49 = vrot.slane %v1946_v27, 3  ;;  %v509_v52 = vrot.slane %v1900_v6, 7 }
   0xf   :  { %v437_v47 = vsel %vm3338_vm5, %v434_v35, %v436_v45  ;;  %v294_v55 = vrot.slane %v1946_v27, 4  ;;  %v77_v56 = vrot.slane %v2008_v53, 1  ;;  %v365_v59 = vrot.slane %v1920_v16, 5  ;;  %v991_v35 = vld [vmem:[%s3314_s1 + $0x28] sm:$0xff] }
  0x10   :  { %v1999_v50 = vsel %vm3334_vm3, %v290_v26, %v292_v48  ;;  %v2002_v51 = vsel %vm3339_vm2, %v219_v39, %v221_v49  ;;  %v510_v54 = vsel %vm3336_vm6, %v507_v44, %v509_v52  ;;  %v79_v62 = vrot.slane %v2030_v60, 1  ;;  %v988_v26 = vld [vmem:[%s3314_s1 + $0x10] sm:$0xff] }
  0x11   :  { %102 = vrot.lane.b32.xlu1 %v1937_v22, %s1816_s16  ;;  %317 = vrot.lane.b32.xlu0 %v289_v23, %s1818_s22  ;;  %v2021_v57 = vsel %vm3334_vm3, %v292_v48, %v294_v55  ;;  %v2024_v58 = vsel %vm3333_vm1, %v75_v31, %v77_v56  ;;  %v366_v61 = vsel %vm3335_vm4, %v363_v36, %v365_v59  ;;  %v367_v2 = vrot.slane %v1946_v27, 5 }
  0x12   :  { %v2044_v63 = vsel %vm3333_vm1, %v77_v56, %v79_v62  ;;  %v150_v3 = vrot.slane %v2008_v53, 2  ;;  %v438_v7 = vrot.slane %v1920_v16, 6  ;;  %v152_v9 = vrot.slane %v2030_v60, 2 }
  0x13   :  { %v368_v4 = vsel %vm3335_vm4, %v365_v59, %v367_v2  ;;  %v440_v11 = vrot.slane %v1946_v27, 6  ;;  %v511_v17 = vrot.slane %v1920_v16, 7  ;;  %v225_v20 = vrot.slane %v2030_v60, 3 }
  0x14   :  { %v2056_v5 = vsel %vm140_vm0, %v148_v40, %v150_v3  ;;  %v439_v8 = vsel %vm3338_vm5, %v436_v45, %v438_v7  ;;  %v2070_v10 = vsel %vm140_vm0, %v150_v3, %v152_v9  ;;  %v513_v24 = vrot.slane %v1946_v27, 7  ;;  %v2168_v45 = vld [vmem:[%s3313_s0 + $0x48] sm:$0xff] }
  0x15   :  { %390 = vrot.lane.b32.xlu1 %v362_v28, %s1819_s23  ;;  %319 = vrot.lane.b32.xlu0 %v1953_v29, %s1818_s22  ;;  %v441_v14 = vsel %vm3338_vm5, %v438_v7, %v440_v11  ;;  %v512_v19 = vsel %vm3336_vm6, %v509_v52, %v511_v17  ;;  %v296_v25 = vrot.slane %v2008_v53, 4  ;;  %v989_v28 = vld [vmem:[%s3314_s1 + $0x18] sm:$0xff]  ;;  %v369_v40 = vrot.slane %v2008_v53, 5  ;;  %3346 = vst [vmem:[#allocation5_spill] sm:$0xff] %v2168_v45 }
  0x16   :  { %v514_v30 = vsel %vm3336_vm6, %v511_v17, %v513_v24  ;;  %v1729_v32 = vpack.c.bf16 %v989_v28, %v988_v26  ;;  %v298_v41 = vrot.slane %v2030_v60, 4  ;;  %v156_v56 = vrot.slane %v2168_v45, 2 }
  0x17   :  { %v2120_v31 = vsel %vm3334_vm3, %v294_v55, %v296_v25  ;;  %v442_v55 = vrot.slane %v2008_v53, 6  ;;  %vm806_vm7 = vcmask 31744   ;;  %vm821_vm8 = vcmask 64512  }
  0x18   :  { %v2162_v44 = vsel %vm3334_vm3, %v296_v25, %v298_v41  ;;  %v2275_v25 = vld [vmem:[%s3313_s0 + $0x58] sm:$0xff]  ;;  %vm836_vm9 = vcmask 97280   ;;  %vm851_vm10 = vcmask 130048   ;;  %vm866_vm11 = vcmask 162816  }
  0x19   :  { %175 = vrot.lane.b32.xlu1 %v1962_v33, %s1815_s15  ;;  %104 = vrot.lane.b32.xlu0 %v1965_v34, %s1816_s16  ;;  %vm881_vm12 = vcmask 195584   ;;  %vm896_vm13 = vcmask 228352   ;;  %vm911_vm14 = vcmask 261120   ;;  %vm926_vm15 = vcmask 293888  }
  0x1d   :  { %463 = vrot.lane.b32.xlu1 %v435_v37, %s1820_s24  ;;  %392 = vrot.lane.b32.xlu0 %v364_v38, %s1819_s23  ;;  %v992_v38 = vld [vmem:[%s3314_s1 + $0x30] sm:$0xf] }
  0x21   :  { %248 = vrot.lane.b32.xlu1 %v1981_v42, %s1817_s19  ;;  %177 = vrot.lane.b32.xlu0 %v1984_v43, %s1815_s15 }
  0x25   :  { %536 = vrot.lane.b32.xlu1 %v508_v46, %s1821_s25  ;;  %465 = vrot.lane.b32.xlu0 %v437_v47, %s1820_s24  ;;  %v2173_v46 = vld [vmem:[%s3313_s0 + $0x50] sm:$0xff] }
  0x26   :  { %v84_v47 = vrot.slane %v2173_v46, 1  ;;  %v157_v59 = vrot.slane %v2173_v46, 2 }
  0x29   :  { %321 = vrot.lane.b32.xlu1 %v1999_v50, %s1818_s22  ;;  %250 = vrot.lane.b32.xlu0 %v2002_v51, %s1817_s19 }
  0x2d   :  { %578 = vrot.lane.b32.xlu1 %v1891_v1, %s1822_s28  ;;  %538 = vrot.lane.b32.xlu0 %v510_v54, %s1821_s25 }
  0x31   :  { %323 = vrot.lane.b32.xlu1 %v2021_v57, %s1818_s22  ;;  %106 = vrot.lane.b32.xlu0 %v2024_v58, %s1816_s16 }
  0x35   :  { %580 = vrot.lane.b32.xlu1 %v1900_v6, %s1822_s28  ;;  %394 = vrot.lane.b32.xlu0 %v366_v61, %s1819_s23  ;;  %v158_v61 = vsel %vm140_vm0, %v156_v56, %v157_v59 }
  0x39   :  { %108 = vrot.lane.b32.xlu1 %v2044_v63, %s1816_s16  ;;  %626 = vrot.lane.b32.xlu0 %v1913_v13, %s1823_s10  ;;  %v223_v13 = vrot.slane %v2008_v53, 3 }
  0x3b   :  { %v2082_v15 = vsel %vm3339_vm2, %v221_v49, %v223_v13  ;;  %v2102_v23 = vsel %vm3339_vm2, %v223_v13, %v225_v20  ;;  %v371_v49 = vrot.slane %v2030_v60, 5 }
  0x3d   :  { %396 = vrot.lane.b32.xlu1 %v368_v4, %s1819_s23  ;;  %179 = vrot.lane.b32.xlu0 %v2056_v5, %s1815_s15  ;;  %v372_v54 = vsel %vm3335_vm4, %v369_v40, %v371_v49  ;;  %v515_v4 = vrot.slane %v2008_v53, 7 }
  0x41   :  { %628 = vrot.lane.b32.xlu1 %v1937_v22, %s1823_s10  ;;  %467 = vrot.lane.b32.xlu0 %v439_v8, %s1820_s24 }
  0x45   :  { %181 = vrot.lane.b32.xlu1 %v2070_v10, %s1815_s15  ;;  %672 = vrot.lane.b32.xlu0 %v1910_v12, %s1824_s11  ;;  %v986_v12 = vld [vmem:[%s3314_s1] sm:$0xff] }
  0x46   :  { %v1725_v22 = vpack.c.bf16 %v987_v21, %v986_v12 }
  0x48   :  { %1726 = vmatprep.subr.bf16.mxu0 %v1725_v22 }
  0x49   :  { %469 = vrot.lane.b32.xlu1 %v441_v14, %s1820_s24  ;;  %252 = vrot.lane.b32.xlu0 %v2082_v15, %s1817_s19 }
  0x4a   :  { %1728 = vmatpush3.bf16.msra.mxu0 %v1725_v22 }
  0x4b   :  { %1730 = vmatprep.subr.bf16.mxu0 %v1729_v32 }
  0x4d   :  { %674 = vrot.lane.b32.xlu1 %v1962_v33, %s1824_s11  ;;  %540 = vrot.lane.b32.xlu0 %v512_v19, %s1821_s25  ;;  %v990_v33 = vld [vmem:[%s3314_s1 + $0x20] sm:$0xff] }
  0x4e   :  { %1732 = vmatpush3.bf16.msra.mxu0 %v1729_v32  ;;  %v1733_v37 = vpack.c.bf16 %v991_v35, %v990_v33  ;;  %v302_v33 = vrot.slane %v2168_v45, 4  ;;  %v303_v35 = vrot.slane %v2173_v46, 4 }
  0x50   :  { %1734 = vmatprep.subr.bf16.mxu0 %v1733_v37 }
  0x51   :  { %254 = vrot.lane.b32.xlu1 %v2102_v23, %s1817_s19  ;;  %718 = vrot.lane.b32.xlu0 %v1928_v18, %s1825_s18  ;;  %v2125_v18 = vld [vmem:[%s3313_s0 + $0x38] sm:$0xff] }
  0x52   :  { %v3330_v36 = vrot.slane %v2125_v18, 1  ;;  %1736 = vmatpush3.bf16.msra.mxu0 %v1733_v37  ;;  %v3327_v52 = vrot.slane %v2125_v18, 2  ;;  %v3323_v19 = vrot.slane %v2125_v18, 4  ;;  %v373_v32 = vrot.slane %v2125_v18, 5 }
  0x53   :  { %1657 = vmatprep.subr.msk.mxu0 %vm3334_vm3, %v992_v38 }
  0x54   :  { %v2149_v39 = vsel %vm3333_vm1, %v79_v62, %v3330_v36  ;;  %v444_v62 = vrot.slane %v2030_v60, 6  ;;  %v2266_v21 = vsel %vm3334_vm3, %v298_v41, %v3323_v19 }
  0x55   :  { %542 = vrot.lane.b32.xlu1 %v514_v30, %s1821_s25  ;;  %325 = vrot.lane.b32.xlu0 %v2120_v31, %s1818_s22 }
  0x56   :  { %1658 = vmatpush3.msk.msra.mxu0 %vm3334_vm3, %v992_v38  ;;  %v445_v3 = vsel %vm3338_vm5, %v442_v55, %v444_v62 }
  0x59   :  { %720 = vrot.lane.b32.xlu1 %v1981_v42, %s1825_s18  ;;  %582 = vrot.lane.b32.xlu0 %v1920_v16, %s1822_s28  ;;  %v370_v42 = vsel %vm3335_vm4, %v367_v2, %v369_v40  ;;  %v3324_v2 = vrot.slane %v2125_v18, 3 }
  0x5d   :  { %110 = vrot.lane.b32.xlu1 %v2149_v39, %s1816_s16  ;;  %764 = vrot.lane.b32.xlu0 %v1953_v29, %s1826_s26  ;;  %v83_v29 = vrot.slane %v2168_v45, 1 }
  0x5f   :  { %v85_v48 = vsel %vm3333_vm1, %v83_v29, %v84_v47 }
  0x61   :  { %398 = vrot.lane.b32.xlu1 %v370_v42, %s1819_s23  ;;  %327 = vrot.lane.b32.xlu0 %v2162_v44, %s1818_s22  ;;  %v2314_v42 = vld [vmem:[%s3313_s0 + $0x60] sm:$0xff] }
  0x65   :  { %630 = vrot.lane.b32.xlu1 %v1965_v34, %s1823_s10  ;;  %584 = vrot.lane.b32.xlu0 %v1946_v27, %s1822_s28  ;;  %v2196_v34 = vsel %vm140_vm0, %v152_v9, %v3327_v52  ;;  %v229_v9 = vrot.slane %v2168_v45, 3  ;;  %v517_v27 = vrot.slane %v2030_v60, 7  ;;  %v3331_v52 = vrot.slane %v2314_v42, 4 }
  0x69   :  { %112 = vrot.lane.b32.xlu1 %v85_v48, %s1816_s16  ;;  %766 = vrot.lane.b32.xlu0 %v1999_v50, %s1826_s26  ;;  %v443_v50 = vsel %vm3338_vm5, %v440_v11, %v442_v55  ;;  %v230_v11 = vrot.slane %v2173_v46, 3  ;;  %v159_v55 = vrot.slane %v2275_v25, 2 }
  0x6b   :  { %v231_v17 = vsel %vm3339_vm2, %v229_v9, %v230_v11  ;;  %v3329_v9 = vrot.slane %v2314_v42, 2 }
  0x6d   :  { %400 = vrot.lane.b32.xlu1 %v372_v54, %s1819_s23  ;;  %183 = vrot.lane.b32.xlu0 %v2196_v34, %s1815_s15  ;;  %v376_v54 = vrot.slane %v2173_v46, 5 }
  0x71   :  { %632 = vrot.lane.b32.xlu1 %v2024_v58, %s1823_s10  ;;  %471 = vrot.lane.b32.xlu0 %v443_v50, %s1820_s24  ;;  %v2226_v58 = vsel %vm3339_vm2, %v225_v20, %v3324_v2 }
  0x75   :  { %185 = vrot.lane.b32.xlu1 %v158_v61, %s1815_s15  ;;  %676 = vrot.lane.b32.xlu0 %v1984_v43, %s1824_s11  ;;  %v516_v43 = vsel %vm3336_vm6, %v513_v24, %v515_v4  ;;  %v2349_v61 = vsel %vm140_vm0, %v157_v59, %v159_v55 }
  0x77   :  { %v2229_v7 = vpop.permute.xlu1 %171  ;;  %v2231_v8 = vpop.permute.xlu0 %98 }
  0x79   :  { %473 = vrot.lane.b32.xlu1 %v445_v3, %s1820_s24  ;;  %256 = vrot.lane.b32.xlu0 %v2226_v58, %s1817_s19  ;;  %v446_v3 = vrot.slane %v2125_v18, 6 }
  0x7b   :  { %v2241_v13 = vpop.permute.xlu1 %173  ;;  %v2243_v14 = vpop.permute.xlu0 %100 }
  0x7d   :  { %678 = vrot.lane.b32.xlu1 %v2056_v5, %s1824_s11  ;;  %544 = vrot.lane.b32.xlu0 %v516_v43, %s1821_s25  ;;  %v518_v5 = vsel %vm3336_vm6, %v515_v4, %v517_v27 }
  0x7f   :  { %v2253_v20 = vpop.permute.xlu1 %246  ;;  %v2255_v12 = vpop.permute.xlu0 %244 }
  0x81   :  { %258 = vrot.lane.b32.xlu1 %v231_v17, %s1817_s19  ;;  %722 = vrot.lane.b32.xlu0 %v2002_v51, %s1825_s18  ;;  %v86_v51 = vrot.slane %v2275_v25, 1 }
  0x83   :  { %v2268_v22 = vpop.permute.xlu1 %102  ;;  %v2270_v24 = vpop.permute.xlu0 %317  ;;  %v2290_v30 = vsel %vm3333_vm1, %v84_v47, %v86_v51 }
  0x85   :  { %546 = vrot.lane.b32.xlu1 %v518_v5, %s1821_s25  ;;  %329 = vrot.lane.b32.xlu0 %v2266_v21, %s1818_s22  ;;  %v2373_v5 = vsel %vm140_vm0, %v159_v55, %v3329_v9 }
  0x87   :  { %v2281_v26 = vpop.permute.xlu1 %390  ;;  %v2283_v28 = vpop.permute.xlu0 %319 }
  0x89   :  { %724 = vrot.lane.b32.xlu1 %v2082_v15, %s1825_s18  ;;  %586 = vrot.lane.b32.xlu0 %v2008_v53, %s1822_s28  ;;  %v374_v53 = vsel %vm3335_vm4, %v371_v49, %v373_v32  ;;  %v304_v15 = vsel %vm3334_vm3, %v302_v33, %v303_v35  ;;  %v375_v49 = vrot.slane %v2168_v45, 5  ;;  %v232_v32 = vrot.slane %v2275_v25, 3 }
  0x8b   :  { %v2295_v37 = vpop.permute.xlu1 %175  ;;  %v2297_v38 = vpop.permute.xlu0 %104 }
  0x8d   :  { %114 = vrot.lane.b32.xlu1 %v2290_v30, %s1816_s16  ;;  %768 = vrot.lane.b32.xlu0 %v2021_v57, %s1826_s26  ;;  %v88_v57 = vrot.slane %v2314_v42, 1 }
  0x8f   :  { %v2307_v40 = vpop.permute.xlu1 %463  ;;  %v2309_v41 = vpop.permute.xlu0 %392  ;;  %v2330_v48 = vsel %vm3333_vm1, %v86_v51, %v88_v57  ;;  %v448_v51 = vrot.slane %v2168_v45, 6 }
  0x91   :  { %402 = vrot.lane.b32.xlu1 %v374_v53, %s1819_s23  ;;  %331 = vrot.lane.b32.xlu0 %v304_v15, %s1818_s22  ;;  %v2392_v15 = vsel %vm3339_vm2, %v230_v11, %v232_v32 }
  0x93   :  { %v2319_v29 = vpop.permute.xlu1 %248  ;;  %v2321_v47 = vpop.permute.xlu0 %177 }
  0x95   :  { %634 = vrot.lane.b32.xlu1 %v2044_v63, %s1823_s10  ;;  %588 = vrot.lane.b32.xlu0 %v2030_v60, %s1822_s28  ;;  %v377_v63 = vsel %vm3335_vm4, %v375_v49, %v376_v54  ;;  %v519_v49 = vrot.slane %v2125_v18, 7  ;;  %v521_v60 = vrot.slane %v2168_v45, 7 }
  0x97   :  { %v2335_v50 = vpop.permute.xlu1 %536  ;;  %v2337_v56 = vpop.permute.xlu0 %465 }
  0x99   :  { %116 = vrot.lane.b32.xlu1 %v2330_v48, %s1816_s16  ;;  %770 = vrot.lane.b32.xlu0 %v2120_v31, %s1826_s26  ;;  %v447_v31 = vsel %vm3338_vm5, %v444_v62, %v446_v3  ;;  %v3328_v62 = vrot.slane %v2173_v46, 6  ;;  %v3325_v3 = vrot.slane %v2314_v42, 3 }
  0x9b   :  { %v2352_v4 = vpop.permute.xlu1 %321  ;;  %v2354_v43 = vpop.permute.xlu0 %250 }
  0x9d   :  { %404 = vrot.lane.b32.xlu1 %v377_v63, %s1819_s23  ;;  %187 = vrot.lane.b32.xlu0 %v2349_v61, %s1815_s15 }
  0x9f   :  { %v2363_v17 = vpop.permute.xlu1 %578  ;;  %v2365_v59 = vpop.permute.xlu0 %538 }
  0xa1   :  { %636 = vrot.lane.b32.xlu1 %v2149_v39, %s1823_s10  ;;  %475 = vrot.lane.b32.xlu0 %v447_v31, %s1820_s24  ;;  %v450_v39 = vsel %vm3338_vm5, %v448_v51, %v3328_v62  ;;  %v2416_v51 = vsel %vm3339_vm2, %v232_v32, %v3325_v3  ;;  %v2444_v3 = vld [vmem:[%s3313_s0 + $0x68] sm:$0xff] }
  0xa3   :  { %v2378_v33 = vpop.permute.xlu1 %323  ;;  %v2380_v53 = vpop.permute.xlu0 %106 }
  0xa4   :  { %3347 = vst [vmem:[#allocation6_spill] sm:$0xff] %v2380_v53 }
  0xa5   :  { %189 = vrot.lane.b32.xlu1 %v2373_v5, %s1815_s15  ;;  %680 = vrot.lane.b32.xlu0 %v2070_v10, %s1824_s11  ;;  %v520_v10 = vsel %vm3336_vm6, %v517_v27, %v519_v49  ;;  %v3326_v27 = vrot.slane %v2173_v46, 7 }
  0xa7   :  { %v2395_v55 = vpop.permute.xlu1 %580  ;;  %v2397_v63 = vpop.permute.xlu0 %394 }
  0xa9   :  { %477 = vrot.lane.b32.xlu1 %v450_v39, %s1820_s24  ;;  %260 = vrot.lane.b32.xlu0 %v2392_v15, %s1817_s19  ;;  %v305_v39 = vrot.slane %v2275_v25, 4 }
  0xab   :  { %v2406_v31 = vpop.permute.xlu1 %108  ;;  %v2408_v11 = vpop.permute.xlu0 %626  ;;  %v2435_v32 = vsel %vm3334_vm3, %v303_v35, %v305_v39  ;;  %v2482_v36 = vsel %vm3334_vm3, %v305_v39, %v3331_v52  ;;  %v807_v52 = vsel %vm806_vm7, %v1886_v0, %v2231_v8  ;;  %v3337_v0 = vrot.slane %v2314_v42, 5 }
  0xac   :  { %3348 = vst [vmem:[#allocation7_spill] sm:$0xff] %v2406_v31  ;;  %v163_v8 = vrot.slane %v2444_v3, 2  ;;  %vm956_vm3 = vcmask 359424  }
  0xad   :  { %682 = vrot.lane.b32.xlu1 %v2196_v34, %s1824_s11  ;;  %548 = vrot.lane.b32.xlu0 %v520_v10, %s1821_s25  ;;  %v523_v34 = vsel %vm3336_vm6, %v521_v60, %v3326_v27  ;;  %vm1000_vm6 = vcmask 424960  }
  0xaf   :  { %v2421_v49 = vpop.permute.xlu1 %396  ;;  %v2423_v19 = vpop.permute.xlu0 %179 }
  0xb0   :  { %3349 = vst [vmem:[#allocation8_spill] sm:$0xff] %v2423_v19  ;;  %v2492_v19 = vld [vmem:[%s3313_s0 + $0x70] sm:$0xff] }
  0xb1   :  { %262 = vrot.lane.b32.xlu1 %v2416_v51, %s1817_s19  ;;  %726 = vrot.lane.b32.xlu0 %v2102_v23, %s1825_s18  ;;  %v90_v23 = vrot.slane %v2444_v3, 1  ;;  %v92_v39 = vrot.slane %v2492_v19, 1 }
  0xb3   :  { %v2437_v10 = vpop.permute.xlu1 %628  ;;  %v2439_v2 = vpop.permute.xlu0 %467  ;;  %v2459_v27 = vsel %vm3333_vm1, %v88_v57, %v90_v23 }
  0xb5   :  { %550 = vrot.lane.b32.xlu1 %v523_v34, %s1821_s25  ;;  %333 = vrot.lane.b32.xlu0 %v2435_v32, %s1818_s22  ;;  %v378_v34 = vrot.slane %v2275_v25, 5 }
  0xb7   :  { %v2450_v60 = vpop.permute.xlu1 %181  ;;  %v673_v35 = vpop.permute.xlu0 %672  ;;  %v379_v57 = vsel %vm3335_vm4, %v376_v54, %v378_v34 }
  0xb8   :  { %3350 = vst [vmem:[#allocation9_spill] sm:$0xff] %v2450_v60 }
  0xb9   :  { %728 = vrot.lane.b32.xlu1 %v2226_v58, %s1825_s18  ;;  %590 = vrot.lane.b32.xlu0 %v2125_v18, %s1822_s28  ;;  %v2470_v58 = vld [vmem:[%s3313_s0 + $0x40] sm:$0xf] }
  0xba   :  { %v622_v60 = vrot.slane %v2470_v58, 1 }
  0xbb   :  { %v2463_v62 = vpop.permute.xlu1 %469  ;;  %v2465_v9 = vpop.permute.xlu0 %252 }
  0xbc   :  { %3351 = vst [vmem:[#allocation10_spill] sm:$0xff] %v2465_v9 }
  0xbd   :  { %118 = vrot.lane.b32.xlu1 %v2459_v27, %s1816_s16  ;;  %772 = vrot.lane.b32.xlu0 %v2162_v44, %s1826_s26  ;;  %v3352_v44 = vrot.slane %v2125_v18, 1 }
  0xbf   :  { %v2485_v31 = vpop.permute.xlu1 %674  ;;  %v2487_v9 = vpop.permute.xlu0 %540  ;;  %v623_v54 = vsel %vm3333_vm1, %v3352_v44, %v622_v60  ;;  %v822_v60 = vsel %vm821_vm8, %v807_v52, %v2229_v7 }
  0xc0   :  { %v837_v44 = vsel %vm836_vm9, %v822_v60, %v2255_v12 }
  0xc1   :  { %406 = vrot.lane.b32.xlu1 %v379_v57, %s1819_s23  ;;  %335 = vrot.lane.b32.xlu0 %v2482_v36, %s1818_s22  ;;  %v2514_v57 = vsel %vm3333_vm1, %v90_v23, %v92_v39  ;;  %v852_v52 = vsel %vm851_vm10, %v837_v44, %v2270_v24  ;;  %v381_v23 = vsel %vm3335_vm4, %v378_v34, %v3337_v0  ;;  %v3354_v24 = vrot.slane %v2314_v42, 2 }
  0xc2   :  { %v867_v7 = vsel %vm866_vm11, %v852_v52, %v2281_v26  ;;  %v451_v26 = vrot.slane %v2275_v25, 6  ;;  %vm941_vm1 = vcmask 326656   ;;  %vm971_vm4 = vcmask 392192  }
  0xc3   :  { %v2504_v53 = vpop.permute.xlu1 %254  ;;  %v719_v45 = vpop.permute.xlu0 %718  ;;  %v882_v12 = vsel %vm881_vm12, %v867_v7, %v2307_v40  ;;  %v2540_v60 = vsel %vm140_vm0, %v3354_v24, %v163_v8  ;;  %v3344_v7 = vrot.slane %v2492_v19, 2 }
  0xc4   :  { %3353 = vst [vmem:[#allocation11_spill] sm:$0xff] %v2504_v53  ;;  %v897_v44 = vsel %vm896_vm13, %v882_v12, %v2335_v50  ;;  %v3355_v12 = vrot.slane %v2173_v46, 6 }
  0xc5   :  { %638 = vrot.lane.b32.xlu1 %v623_v54, %s1823_s10  ;;  %592 = vrot.lane.b32.xlu0 %v2173_v46, %s1822_s28  ;;  %v912_v40 = vsel %vm911_vm14, %v897_v44, %v2363_v17  ;;  %v668_v17 = vrot.slane %v2470_v58, 2 }
  0xc6   :  { %v927_v34 = vsel %vm926_vm15, %v912_v40, %v2408_v11  ;;  %v452_v24 = vsel %vm3338_vm5, %v3355_v12, %v451_v26  ;;  %v808_v11 = vsel %vm806_vm7, %v1891_v1, %v2243_v14 }
  0xc7   :  { %v2520_v54 = vpop.permute.xlu1 %542  ;;  %v2522_v53 = vpop.permute.xlu0 %325  ;;  %v942_v50 = vsel %vm941_vm1, %v927_v34, %v673_v35  ;;  %v2573_v35 = vsel %vm140_vm0, %v163_v8, %v3344_v7  ;;  %v823_v1 = vsel %vm821_vm8, %v808_v11, %v2241_v13  ;;  %v3343_v34 = vrot.slane %v2314_v42, 6 }
  0xc8   :  { %v384_v7 = vrot.slane %v2492_v19, 5 }
  0xc9   :  { %120 = vrot.lane.b32.xlu1 %v2514_v57, %s1816_s16  ;;  %774 = vrot.lane.b32.xlu0 %v2266_v21, %s1826_s26 }
  0xcb   :  { %v721_v52 = vpop.permute.xlu1 %720  ;;  %v2545_v21 = vpop.permute.xlu0 %582 }
  0xcd   :  { %408 = vrot.lane.b32.xlu1 %v381_v23, %s1819_s23  ;;  %191 = vrot.lane.b32.xlu0 %v2540_v60, %s1815_s15  ;;  %v957_v23 = vsel %vm956_vm3, %v942_v50, %v719_v45  ;;  %v3356_v45 = vrot.slane %v2125_v18, 2  ;;  %v838_v50 = vsel %vm836_vm9, %v823_v1, %v2253_v20  ;;  %v454_v20 = vsel %vm3338_vm5, %v451_v26, %v3343_v34 }
  0xce   :  { %v853_v13 = vsel %vm851_vm10, %v838_v50, %v2283_v28  ;;  %v524_v28 = vrot.slane %v2275_v25, 7  ;;  %vm3359_vm5 = vcmask 1040384   ;;  %v714_v50 = vrot.slane %v2470_v58, 3 }
  0xcf   :  { %v2564_v44 = vpop.permute.xlu1 %110  ;;  %v765_v40 = vpop.permute.xlu0 %764  ;;  %v669_v14 = vsel %vm140_vm0, %v3356_v45, %v668_v17  ;;  %v3357_v17 = vrot.slane %v2314_v42, 3 }
  0xd0   :  { %v972_v0 = vsel %vm971_vm4, %v957_v23, %v765_v40 }
  0xd1   :  { %640 = vrot.lane.b32.xlu1 %v2290_v30, %s1823_s10  ;;  %479 = vrot.lane.b32.xlu0 %v452_v24, %s1820_s24  ;;  %v236_v30 = vrot.slane %v2444_v3, 3 }
  0xd2   :  { %1659 = vmatprep.mubr.msk.f32.mxu0 %vm1000_vm6, %v972_v0  ;;  %v868_v0 = vsel %vm866_vm11, %v853_v13, %v2309_v41 }
  0xd3   :  { %v2585_v12 = vpop.permute.xlu1 %398  ;;  %v2587_v8 = vpop.permute.xlu0 %327  ;;  %v883_v24 = vsel %vm881_vm12, %v868_v0, %v2337_v56  ;;  %v2604_v11 = vsel %vm3339_vm2, %v3357_v17, %v236_v30  ;;  %v309_v17 = vrot.slane %v2444_v3, 4 }
  0xd4   :  { %v898_v41 = vsel %vm896_vm13, %v883_v24, %v2365_v59  ;;  %v3358_v59 = vrot.slane %v2173_v46, 7  ;;  %v3360_v24 = vrot.slane %v2125_v18, 3 }
  0xd5   :  { %193 = vrot.lane.b32.xlu1 %v2573_v35, %s1815_s15  ;;  %684 = vrot.lane.b32.xlu0 %v669_v14, %s1824_s11  ;;  %v913_v56 = vsel %vm911_vm14, %v898_v41, %v2395_v55  ;;  %v3341_v14 = vrot.slane %v2492_v19, 3 }
  0xd6   :  { %v928_v26 = vsel %vm926_vm15, %v913_v56, %v2437_v10  ;;  %v525_v45 = vsel %vm3359_vm5, %v3358_v59, %v524_v28  ;;  %v3362_v56 = vrot.slane %v2314_v42, 4 }
  0xd7   :  { %v2609_v23 = vpop.permute.xlu1 %630  ;;  %v2611_v40 = vpop.permute.xlu0 %584  ;;  %v943_v1 = vsel %vm941_vm1, %v928_v26, %v2485_v31  ;;  %v2638_v31 = vsel %vm3339_vm2, %v236_v30, %v3341_v14  ;;  %v2712_v14 = vld [vmem:[%s3313_s0 + $0x80] sm:$0xff] }
  0xd8   :  { %v958_v55 = vsel %vm956_vm3, %v943_v1, %v721_v52  ;;  %v715_v52 = vsel %vm3339_vm2, %v3360_v24, %v714_v50  ;;  %vm3363_vm2 = vcmask 1043456   ;;  %v760_v50 = vrot.slane %v2470_v58, 4 }
  0xd9   :  { %481 = vrot.lane.b32.xlu1 %v454_v20, %s1820_s24  ;;  %264 = vrot.lane.b32.xlu0 %v2604_v11, %s1817_s19  ;;  %v3340_v20 = vrot.slane %v2314_v42, 7  ;;  %v2658_v26 = vsel %vm3363_vm2, %v3362_v56, %v309_v17  ;;  %vm3364_vm2 = vcmask 1046528   ;;  %v3365_v24 = vrot.slane %v2125_v18, 4 }
  0xda   :  { %v382_v58 = vrot.slane %v2444_v3, 5 }
  0xdb   :  { %v2628_v13 = vpop.permute.xlu1 %112  ;;  %v767_v10 = vpop.permute.xlu0 %766  ;;  %v527_v30 = vsel %vm3359_vm5, %v524_v28, %v3340_v20  ;;  %vm3366_vm5 = vcmask 1043456  }
  0xdc   :  { %v973_v0 = vsel %vm971_vm4, %v958_v55, %v767_v10 }
  0xdd   :  { %686 = vrot.lane.b32.xlu1 %v2349_v61, %s1824_s11  ;;  %552 = vrot.lane.b32.xlu0 %v525_v45, %s1821_s25  ;;  %v2667_v45 = vld [vmem:[%s3313_s0 + $0x78] sm:$0xff] }
  0xde   :  { %1660 = vmatmul.mubr.msk.f32.vlgmr.msra.gmra.mrb[0].mxu0 %vm1000_vm6, %v973_v0  ;;  %v94_v28 = vrot.slane %v2667_v45, 1 }
  0xdf   :  { %v2645_v41 = vpop.permute.xlu1 %400  ;;  %v2647_v61 = vpop.permute.xlu0 %183 }
  0xe0   :  { %3361 = vst [vmem:[#allocation12_spill] sm:$0xff] %v2647_v61  ;;  %v2683_v0 = vsel %vm3364_vm2, %v92_v39, %v94_v28  ;;  %vm3369_vm2 = vcmask 1042432  }
  0xe1   :  { %266 = vrot.lane.b32.xlu1 %v2638_v31, %s1817_s19  ;;  %730 = vrot.lane.b32.xlu0 %v715_v52, %s1825_s18  ;;  %v761_v52 = vsel %vm3366_vm5, %v3365_v24, %v760_v50 }
  0xe3   :  { %v2660_v1 = vpop.permute.xlu1 %632  ;;  %v2662_v59 = vpop.permute.xlu0 %471 }
  0xe5   :  { %554 = vrot.lane.b32.xlu1 %v527_v30, %s1821_s25  ;;  %337 = vrot.lane.b32.xlu0 %v2658_v26, %s1818_s22  ;;  %v3342_v30 = vrot.slane %v2492_v19, 4 }
  0xe7   :  { %v2674_v55 = vpop.permute.xlu1 %185  ;;  %v677_v10 = vpop.permute.xlu0 %676  ;;  %v2703_v18 = vsel %vm3366_vm5, %v309_v17, %v3342_v30  ;;  %v809_v30 = vsel %vm806_vm7, %v1900_v6, %v2268_v22  ;;  %vm3371_vm5 = vcmask 1042432  }
  0xe9   :  { %732 = vrot.lane.b32.xlu1 %v2392_v15, %s1825_s18  ;;  %594 = vrot.lane.b32.xlu0 %v2275_v25, %s1822_s28  ;;  %v3368_v15 = vrot.slane %v2314_v42, 5 }
  0xeb   :  { %v2690_v56 = vpop.permute.xlu1 %473  ;;  %v2692_v20 = vpop.permute.xlu0 %256  ;;  %v383_v39 = vsel %vm3369_vm2, %v3368_v15, %v382_v58  ;;  %vm3370_vm2 = vcmask 1046528  }
  0xec   :  { %3367 = vst [vmem:[#allocation13_spill] sm:$0xff] %v2692_v20  ;;  %v167_v20 = vrot.slane %v2667_v45, 2 }
  0xed   :  { %122 = vrot.lane.b32.xlu1 %v2683_v0, %s1816_s16  ;;  %776 = vrot.lane.b32.xlu0 %v761_v52, %s1826_s26  ;;  %v3345_v52 = vrot.slane %v2712_v14, 1 }
  0xef   :  { %v2705_v50 = vpop.permute.xlu1 %678  ;;  %v2707_v24 = vpop.permute.xlu0 %544  ;;  %v2732_v34 = vsel %vm3370_vm2, %v94_v28, %v3345_v52  ;;  %vm3374_vm2 = vcmask 1041408  }
  0xf1   :  { %410 = vrot.lane.b32.xlu1 %v383_v39, %s1819_s23  ;;  %339 = vrot.lane.b32.xlu0 %v2703_v18, %s1818_s22  ;;  %v824_v39 = vsel %vm821_vm8, %v809_v30, %v2295_v37  ;;  %v3372_v30 = vrot.slane %v2492_v19, 2 }
  0xf2   :  { %v839_v6 = vsel %vm836_vm9, %v824_v39, %v2319_v29  ;;  %v385_v29 = vsel %vm3371_vm5, %v382_v58, %v384_v7  ;;  %vm3375_vm5 = vmmov %vm3374_vm2 }
  0xf3   :  { %v2718_v15 = vpop.permute.xlu1 %258  ;;  %v723_v17 = vpop.permute.xlu0 %722  ;;  %v854_v61 = vsel %vm851_vm10, %v839_v6, %v2352_v4  ;;  %v2758_v4 = vsel %vm140_vm0, %v3372_v30, %v167_v20 }
  0xf4   :  { %v869_v37 = vsel %vm866_vm11, %v854_v61, %v2397_v63  ;;  %v455_v63 = vrot.slane %v2444_v3, 6 }
  0xf5   :  { %642 = vrot.lane.b32.xlu1 %v2330_v48, %s1823_s10  ;;  %596 = vrot.lane.b32.xlu0 %v2314_v42, %s1822_s28  ;;  %v884_v28 = vsel %vm881_vm12, %v869_v37, %v2439_v2  ;;  %v3373_v37 = vrot.slane %v2314_v42, 6 }
  0xf6   :  { %v899_v61 = vsel %vm896_vm13, %v884_v28, %v2487_v9  ;;  %v169_v28 = vrot.slane %v2712_v14, 2 }
  0xf7   :  { %v2738_v22 = vpop.permute.xlu1 %546  ;;  %v2740_v48 = vpop.permute.xlu0 %329  ;;  %v914_v2 = vsel %vm911_vm14, %v899_v61, %v2545_v21  ;;  %v456_v9 = vsel %vm3374_vm2, %v3373_v37, %v455_v63  ;;  %v457_v61 = vrot.slane %v2492_v19, 6  ;;  %vm3377_vm2 = vcmask 1044480  }
  0xf9   :  { %124 = vrot.lane.b32.xlu1 %v2732_v34, %s1816_s16  ;;  %778 = vrot.lane.b32.xlu0 %v2435_v32, %s1826_s26  ;;  %v929_v32 = vsel %vm926_vm15, %v914_v2, %v2609_v23  ;;  %v240_v2 = vrot.slane %v2667_v45, 3 }
  0xfa   :  { %v944_v58 = vsel %vm941_vm1, %v929_v32, %v677_v10 }
  0xfb   :  { %v725_v39 = vpop.permute.xlu1 %724  ;;  %v2763_v6 = vpop.permute.xlu0 %586  ;;  %v959_v30 = vsel %vm956_vm3, %v944_v58, %v723_v17  ;;  %v2793_v17 = vsel %vm140_vm0, %v167_v20, %v169_v28  ;;  %v3376_v58 = vrot.slane %v2492_v19, 3 }
  0xfd   :  { %412 = vrot.lane.b32.xlu1 %v385_v29, %s1819_s23  ;;  %195 = vrot.lane.b32.xlu0 %v2758_v4, %s1815_s15  ;;  %v810_v29 = vsel %vm806_vm7, %v1920_v16, %v2297_v38 }
  0xfe   :  { %v825_v10 = vsel %vm821_vm8, %v810_v29, %v2321_v47 }
  0xff   :  { %v2778_v52 = vpop.permute.xlu1 %114  ;;  %v769_v21 = vpop.permute.xlu0 %768  ;;  %v840_v16 = vsel %vm836_vm9, %v825_v10, %v2354_v43  ;;  %v458_v43 = vsel %vm3375_vm5, %v455_v63, %v457_v61  ;;  %vm3379_vm5 = vcmask 1040384  }
 0x100   :  { %v974_v23 = vsel %vm971_vm4, %v959_v30, %v769_v21  ;;  %v855_v47 = vsel %vm851_vm10, %v840_v16, %v2378_v33  ;;  %v2817_v33 = vsel %vm3377_vm2, %v3376_v58, %v240_v2  ;;  %v530_v16 = vrot.slane %v2492_v19, 7 }
 0x101   :  { %644 = vrot.lane.b32.xlu1 %v2459_v27, %s1823_s10  ;;  %483 = vrot.lane.b32.xlu0 %v456_v9, %s1820_s24  ;;  %v870_v32 = vsel %vm866_vm11, %v855_v47, %v2421_v49  ;;  %v528_v49 = vrot.slane %v2444_v3, 7 }
 0x102   :  { %1662 = vmatprep.mubr.msk.f32.mxu0 %vm1000_vm6, %v974_v23  ;;  %v885_v20 = vsel %vm881_vm12, %v870_v32, %v2463_v62  ;;  %v242_v23 = vrot.slane %v2712_v14, 3 }
 0x103   :  { %v2799_v38 = vpop.permute.xlu1 %402  ;;  %v332_v27 = vpop.permute.xlu0 %331  ;;  %v900_v37 = vsel %vm896_vm13, %v885_v20, %v2520_v54  ;;  %v3378_v54 = vrot.slane %v2314_v42, 7  ;;  %v3380_v20 = vrot.slane %v2492_v19, 4 }
 0x104   :  { %v915_v62 = vsel %vm911_vm14, %v900_v37, %v2611_v40  ;;  %v3382_v37 = vld [vmem:[#allocation5_spill] sm:$0xff] }
 0x105   :  { %197 = vrot.lane.b32.xlu1 %v2793_v17, %s1815_s15  ;;  %688 = vrot.lane.b32.xlu0 %v2373_v5, %s1824_s11  ;;  %v930_v63 = vsel %vm926_vm15, %v915_v62, %v2660_v1  ;;  %v529_v21 = vsel %vm3379_vm5, %v3378_v54, %v528_v49 }
 0x106   :  { %v945_v30 = vsel %vm941_vm1, %v930_v63, %v2705_v50  ;;  %v2848_v50 = vsel %vm3377_vm2, %v240_v2, %v242_v23  ;;  %vm3381_vm2 = vcmask 1043456  }
 0x107   :  { %v2822_v9 = vpop.permute.xlu1 %634  ;;  %v2824_v5 = vpop.permute.xlu0 %588  ;;  %v960_v29 = vsel %vm956_vm3, %v945_v30, %v725_v39  ;;  %v313_v39 = vrot.slane %v2667_v45, 4 }
 0x109   :  { %485 = vrot.lane.b32.xlu1 %v458_v43, %s1820_s24  ;;  %268 = vrot.lane.b32.xlu0 %v2817_v33, %s1817_s19  ;;  %v2862_v2 = vsel %vm3381_vm2, %v3380_v20, %v313_v39 }
 0x10b   :  { %v117_v40 = vpop.permute.xlu1 %116  ;;  %v771_v10 = vpop.permute.xlu0 %770 }
 0x10c   :  { %v975_v1 = vsel %vm971_vm4, %v960_v29, %v771_v10  ;;  %v816_v62 = vsel %vm806_vm7, %v2275_v25, %v117_v40  ;;  %v815_v25 = vsel %vm806_vm7, %v2173_v46, %v2778_v52  ;;  %v386_v40 = vrot.slane %v2667_v45, 5 }
 0x10d   :  { %690 = vrot.lane.b32.xlu1 %v2540_v60, %s1824_s11  ;;  %556 = vrot.lane.b32.xlu0 %v529_v21, %s1821_s25  ;;  %v531_v60 = vsel %vm3379_vm5, %v528_v49, %v530_v16  ;;  %v814_v49 = vsel %vm806_vm7, %v3382_v37, %v2628_v13  ;;  %vm3383_vm5 = vmmov %vm3381_vm2  ;;  %vm3384_vm2 = vcmask 1042432  }
 0x10e   :  { %1663 = vmatmul.mubr.msk.f32.gmra.mrb[2].mxu0 %vm1000_vm6, %v975_v1  ;;  %v829_v54 = vsel %vm821_vm8, %v814_v49, %v2674_v55  ;;  %v387_v52 = vsel %vm3384_vm2, %v384_v7, %v386_v40  ;;  %v1788_v7 = vld [vmem:[%s3313_s0 + $0x20] sm:$0xff]  ;;  %v3385_v49 = vld [vmem:[#allocation6_spill] sm:$0xff] }
 0x10f   :  { %v405_v47 = vpop.permute.xlu1 %404  ;;  %v188_v32 = vpop.permute.xlu0 %187  ;;  %v844_v29 = vsel %vm836_vm9, %v829_v54, %v2718_v15 }
 0x110   :  { %v859_v13 = vsel %vm851_vm10, %v844_v29, %v332_v27 }
 0x111   :  { %270 = vrot.lane.b32.xlu1 %v2848_v50, %s1817_s19  ;;  %734 = vrot.lane.b32.xlu0 %v2416_v51, %s1825_s18  ;;  %v315_v51 = vrot.slane %v2712_v14, 4  ;;  %v874_v15 = vsel %vm866_vm11, %v859_v13, %v405_v47  ;;  %v459_v47 = vrot.slane %v2667_v45, 6 }
 0x113   :  { %v2864_v43 = vpop.permute.xlu1 %636  ;;  %v2866_v58 = vpop.permute.xlu0 %475  ;;  %v2893_v55 = vsel %vm3383_vm5, %v313_v39, %v315_v51  ;;  %vm3387_vm5 = vcmask 1041408  }
 0x115   :  { %558 = vrot.lane.b32.xlu1 %v531_v60, %s1821_s25  ;;  %341 = vrot.lane.b32.xlu0 %v2862_v2, %s1818_s22 }
 0x117   :  { %v190_v63 = vpop.permute.xlu1 %189  ;;  %v681_v30 = vpop.permute.xlu0 %680 }
 0x118   :  { %v831_v21 = vsel %vm821_vm8, %v816_v62, %v190_v63  ;;  %v811_v62 = vsel %vm806_vm7, %v1788_v7, %v3385_v49  ;;  %v3386_v63 = vld [vmem:[#allocation8_spill] sm:$0xff] }
 0x119   :  { %736 = vrot.lane.b32.xlu1 %v2604_v11, %s1825_s18  ;;  %598 = vrot.lane.b32.xlu0 %v2444_v3, %s1822_s28  ;;  %v830_v11 = vsel %vm821_vm8, %v815_v25, %v188_v32  ;;  %v388_v32 = vrot.slane %v2712_v14, 5  ;;  %v826_v54 = vsel %vm821_vm8, %v811_v62, %v3386_v63  ;;  %v3388_v25 = vld [vmem:[#allocation10_spill] sm:$0xff]  ;;  %v3391_v62 = vld [vmem:[#allocation7_spill] sm:$0xff] }
 0x11a   :  { %v841_v13 = vsel %vm836_vm9, %v826_v54, %v3388_v25 }
 0x11b   :  { %v478_v10 = vpop.permute.xlu1 %477  ;;  %v261_v1 = vpop.permute.xlu0 %260  ;;  %v389_v29 = vsel %vm3384_vm2, %v386_v40, %v388_v32  ;;  %v532_v40 = vrot.slane %v2667_v45, 7  ;;  %vm3390_vm2 = vcmask 1041408  }
 0x11c   :  { %v2899_v60 = vsel %vm881_vm12, %v874_v15, %v478_v10  ;;  %v845_v46 = vsel %vm836_vm9, %v830_v11, %v261_v1  ;;  %v461_v1 = vrot.slane %v2712_v14, 6 }
 0x11d   :  { %343 = vrot.lane.b32.xlu1 %v2893_v55, %s1818_s22  ;;  %780 = vrot.lane.b32.xlu0 %v2482_v36, %s1826_s26 }
 0x11f   :  { %v2909_v27 = vpop.permute.xlu1 %682  ;;  %v2911_v39 = vpop.permute.xlu0 %548 }
 0x121   :  { %600 = vrot.lane.b32.xlu1 %v2492_v19, %s1822_s28  ;;  %414 = vrot.lane.b32.xlu0 %v387_v52, %s1819_s23 }
 0x123   :  { %v263_v20 = vpop.permute.xlu1 %262  ;;  %v727_v37 = vpop.permute.xlu0 %726 }
 0x124   :  { %v846_v36 = vsel %vm836_vm9, %v831_v21, %v263_v20  ;;  %v460_v21 = vsel %vm3387_vm5, %v457_v61, %v459_v47  ;;  %vm3389_vm5 = vcmask 1040384   ;;  %v462_v20 = vsel %vm3390_vm2, %v459_v47, %v461_v1 }
 0x125   :  { %782 = vrot.lane.b32.xlu1 %v2658_v26, %s1826_s26  ;;  %646 = vrot.lane.b32.xlu0 %v2514_v57, %s1823_s10  ;;  %v856_v26 = vsel %vm851_vm10, %v841_v13, %v2522_v53  ;;  %v534_v47 = vrot.slane %v2712_v14, 7  ;;  %vm3395_vm2 = vcmask 1046528  }
 0x126   :  { %v871_v10 = vsel %vm866_vm11, %v856_v26, %v2585_v12 }
 0x127   :  { %v2936_v15 = vpop.permute.xlu1 %550  ;;  %v334_v11 = vpop.permute.xlu0 %333  ;;  %v886_v61 = vsel %vm881_vm12, %v871_v10, %v2662_v59  ;;  %v535_v10 = vsel %vm3389_vm5, %v532_v40, %v534_v47 }
 0x128   :  { %v860_v57 = vsel %vm851_vm10, %v845_v46, %v334_v11  ;;  %v901_v52 = vsel %vm896_vm13, %v886_v61, %v2707_v24  ;;  %v533_v24 = vsel %vm3389_vm5, %v530_v16, %v532_v40  ;;  %v3392_v16 = vld [vmem:[#allocation9_spill] sm:$0xff]  ;;  %vm3396_vm5 = vcmask 1044480  }
 0x129   :  { %487 = vrot.lane.b32.xlu1 %v460_v21, %s1820_s24  ;;  %416 = vrot.lane.b32.xlu0 %v389_v29, %s1819_s23  ;;  %v916_v12 = vsel %vm911_vm14, %v901_v52, %v2763_v6  ;;  %v50_v40 = vld [vmem:[%s3313_s0 + $0x88] sm:$0xf] }
 0x12a   :  { %v931_v46 = vsel %vm926_vm15, %v916_v12, %v2822_v9 }
 0x12b   :  { %v729_v53 = vpop.permute.xlu1 %728  ;;  %v2951_v32 = vpop.permute.xlu0 %590  ;;  %v946_v59 = vsel %vm941_vm1, %v931_v46, %v681_v30  ;;  %v670_v46 = vrot.slane %v50_v40, 2 }
 0x12c   :  { %v961_v7 = vsel %vm956_vm3, %v946_v59, %v727_v37  ;;  %v3393_v37 = vld [vmem:[#allocation11_spill] sm:$0xff] }
 0x12d   :  { %692 = vrot.lane.b32.xlu1 %v2573_v35, %s1824_s11  ;;  %648 = vrot.lane.b32.xlu0 %v2683_v0, %s1823_s10  ;;  %v1789_v35 = vld [vmem:[%s3313_s0 + $0x28] sm:$0xff] }
 0x12e   :  { %v812_v0 = vsel %vm806_vm7, %v1789_v35, %v3391_v62  ;;  %v762_v35 = vrot.slane %v50_v40, 4 }
 0x12f   :  { %v119_v6 = vpop.permute.xlu1 %118  ;;  %v773_v49 = vpop.permute.xlu0 %772  ;;  %v827_v30 = vsel %vm821_vm8, %v812_v0, %v3392_v16 }
 0x130   :  { %v976_v9 = vsel %vm971_vm4, %v961_v7, %v773_v49  ;;  %v842_v63 = vsel %vm836_vm9, %v827_v30, %v3393_v37 }
 0x131   :  { %560 = vrot.lane.b32.xlu1 %v533_v24, %s1821_s25  ;;  %489 = vrot.lane.b32.xlu0 %v462_v20, %s1820_s24  ;;  %v857_v29 = vsel %vm851_vm10, %v842_v63, %v2587_v8  ;;  %v716_v20 = vrot.slane %v50_v40, 3  ;;  %v1790_v63 = vld [vmem:[%s3313_s0 + $0x30] sm:$0xff] }
 0x132   :  { %1665 = vmatprep.mubr.msk.f32.mxu0 %vm1000_vm6, %v976_v9  ;;  %v872_v11 = vsel %vm866_vm11, %v857_v29, %v2645_v41 }
 0x133   :  { %v407_v54 = vpop.permute.xlu1 %406  ;;  %v336_v21 = vpop.permute.xlu0 %335  ;;  %v887_v26 = vsel %vm881_vm12, %v872_v11, %v2690_v56 }
 0x134   :  { %v875_v25 = vsel %vm866_vm11, %v860_v57, %v407_v54  ;;  %v861_v13 = vsel %vm851_vm10, %v846_v36, %v336_v21  ;;  %v902_v8 = vsel %vm896_vm13, %v887_v26, %v2738_v22  ;;  %v3399_v54 = vld [vmem:[#allocation13_spill] sm:$0xff] }
 0x135   :  { %738 = vrot.lane.b32.xlu1 %v2638_v31, %s1825_s18  ;;  %694 = vrot.lane.b32.xlu0 %v2758_v4, %s1824_s11  ;;  %v917_v41 = vsel %vm911_vm14, %v902_v8, %v2824_v5 }
 0x136   :  { %v932_v31 = vsel %vm926_vm15, %v917_v41, %v2864_v43  ;;  %v624_v43 = vrot.slane %v50_v40, 1 }
 0x137   :  { %v2996_v57 = vpop.permute.xlu1 %638  ;;  %v2998_v36 = vpop.permute.xlu0 %592  ;;  %v947_v56 = vsel %vm941_vm1, %v932_v31, %v2909_v27  ;;  %v817_v27 = vsel %vm806_vm7, %v2314_v42, %v119_v6 }
 0x138   :  { %v962_v22 = vsel %vm956_vm3, %v947_v56, %v729_v53 }
 0x139   :  { %602 = vrot.lane.b32.xlu1 %v2667_v45, %s1822_s28  ;;  %562 = vrot.lane.b32.xlu0 %v535_v10, %s1821_s25 }
 0x13b   :  { %v121_v4 = vpop.permute.xlu1 %120  ;;  %v775_v61 = vpop.permute.xlu0 %774 }
 0x13c   :  { %v977_v5 = vsel %vm971_vm4, %v962_v22, %v775_v61  ;;  %v818_v7 = vsel %vm806_vm7, %v2444_v3, %v121_v4 }
 0x13d   :  { %784 = vrot.lane.b32.xlu1 %v2703_v18, %s1826_s26  ;;  %740 = vrot.lane.b32.xlu0 %v2817_v33, %s1825_s18  ;;  %v3394_v18 = vrot.slane %v2712_v14, 1 }
 0x13e   :  { %1666 = vmatmul.mubr.msk.f32.gmra.mrb[4].mxu0 %vm1000_vm6, %v977_v5 }
 0x13f   :  { %v409_v1 = vpop.permute.xlu1 %408  ;;  %v192_v52 = vpop.permute.xlu0 %191  ;;  %v625_v33 = vsel %vm3395_vm2, %v3394_v18, %v624_v43 }
 0x140   :  { %v876_v53 = vsel %vm866_vm11, %v861_v13, %v409_v1  ;;  %v832_v12 = vsel %vm821_vm8, %v817_v27, %v192_v52 }
 0x141   :  { %650 = vrot.lane.b32.xlu1 %v2732_v34, %s1823_s10  ;;  %604 = vrot.lane.b32.xlu0 %v2712_v14, %s1822_s28  ;;  %v671_v34 = vsel %vm140_vm0, %v169_v28, %v670_v46  ;;  %vm3397_vm0 = vcmask 1043456   ;;  %v813_v14 = vsel %vm806_vm7, %v1790_v63, %v2564_v44 }
 0x143   :  { %v641_v59 = vpop.permute.xlu1 %640  ;;  %v480_v24 = vpop.permute.xlu0 %479 }
 0x144   :  { %v3031_v42 = vsel %vm881_vm12, %v875_v25, %v480_v24 }
 0x145   :  { %652 = vrot.lane.b32.xlu1 %v625_v33, %s1823_s10  ;;  %786 = vrot.lane.b32.xlu0 %v2862_v2, %s1826_s26  ;;  %v717_v2 = vsel %vm3396_vm5, %v242_v23, %v716_v20 }
 0x147   :  { %v194_v6 = vpop.permute.xlu1 %193  ;;  %v685_v49 = vpop.permute.xlu0 %684 }
 0x148   :  { %v833_v9 = vsel %vm821_vm8, %v818_v7, %v194_v6 }
 0x149   :  { %698 = vrot.lane.b32.xlu1 %v671_v34, %s1824_s11  ;;  %696 = vrot.lane.b32.xlu0 %v2793_v17, %s1824_s11  ;;  %v763_v17 = vsel %vm3397_vm0, %v315_v51, %v762_v35 }
 0x14b   :  { %v482_v62 = vpop.permute.xlu1 %481  ;;  %v265_v28 = vpop.permute.xlu0 %264 }
 0x14c   :  { %v3049_v0 = vsel %vm881_vm12, %v876_v53, %v482_v62  ;;  %v847_v3 = vsel %vm836_vm9, %v832_v12, %v265_v28 }
 0x14d   :  { %744 = vrot.lane.b32.xlu1 %v717_v2, %s1825_s18  ;;  %742 = vrot.lane.b32.xlu0 %v2848_v50, %s1825_s18  ;;  %v3398_v50 = vld [vmem:[#allocation12_spill] sm:$0xff] }
 0x14e   :  { %v828_v51 = vsel %vm821_vm8, %v813_v14, %v3398_v50 }
 0x14f   :  { %v687_v16 = vpop.permute.xlu1 %686  ;;  %v553_v30 = vpop.permute.xlu0 %552  ;;  %v843_v21 = vsel %vm836_vm9, %v828_v51, %v3399_v54 }
 0x150   :  { %v858_v25 = vsel %vm851_vm10, %v843_v21, %v2740_v48 }
 0x151   :  { %790 = vrot.lane.b32.xlu1 %v763_v17, %s1826_s26  ;;  %788 = vrot.lane.b32.xlu0 %v2893_v55, %s1826_s26  ;;  %v873_v11 = vsel %vm866_vm11, %v858_v25, %v2799_v38  ;;  %v905_v17 = vsel %vm896_vm13, %v3031_v42, %v553_v30 }
 0x152   :  { %v888_v44 = vsel %vm881_vm12, %v873_v11, %v2866_v58 }
 0x153   :  { %v267_v23 = vpop.permute.xlu1 %266  ;;  %v731_v47 = vpop.permute.xlu0 %730  ;;  %v903_v26 = vsel %vm896_vm13, %v888_v44, %v2911_v39 }
 0x154   :  { %v848_v37 = vsel %vm836_vm9, %v833_v9, %v267_v23  ;;  %v918_v41 = vsel %vm911_vm14, %v903_v26, %v2951_v32 }
 0x155   :  { %v933_v31 = vsel %vm926_vm15, %v918_v41, %v2996_v57  ;;  %v904_v57 = vsel %vm896_vm13, %v2899_v60, %v2936_v15 }
 0x156   :  { %v948_v48 = vsel %vm941_vm1, %v933_v31, %v685_v49  ;;  %v919_v43 = vsel %vm911_vm14, %v904_v57, %v2998_v36 }
 0x157   :  { %v3071_v29 = vpop.permute.xlu1 %554  ;;  %v338_v55 = vpop.permute.xlu0 %337  ;;  %v963_v56 = vsel %vm956_vm3, %v948_v48, %v731_v47  ;;  %v934_v27 = vsel %vm926_vm15, %v919_v43, %v641_v59 }
 0x158   :  { %v862_v13 = vsel %vm851_vm10, %v847_v3, %v338_v55  ;;  %v949_v1 = vsel %vm941_vm1, %v934_v27, %v687_v16  ;;  %v906_v42 = vsel %vm896_vm13, %v3049_v0, %v3071_v29 }
 0x15b   :  { %v733_v10 = vpop.permute.xlu1 %732  ;;  %v595_v8 = vpop.permute.xlu0 %594 }
 0x15c   :  { %v964_v52 = vsel %vm956_vm3, %v949_v1, %v733_v10 }
 0x15f   :  { %v123_v22 = vpop.permute.xlu1 %122  ;;  %v777_v38 = vpop.permute.xlu0 %776 }
 0x160   :  { %v978_v4 = vsel %vm971_vm4, %v963_v56, %v777_v38  ;;  %v819_v60 = vsel %vm806_vm7, %v2492_v19, %v123_v22 }
 0x161   :  { %1668 = vmatprep.mubr.msk.f32.mxu0 %vm1000_vm6, %v978_v4 }
 0x163   :  { %v411_v58 = vpop.permute.xlu1 %410  ;;  %v340_v39 = vpop.permute.xlu0 %339 }
 0x164   :  { %v3091_v61 = vsel %vm866_vm11, %v862_v13, %v411_v58  ;;  %v863_v32 = vsel %vm851_vm10, %v848_v37, %v340_v39 }
 0x167   :  { %v643_v40 = vpop.permute.xlu1 %642  ;;  %v597_v5 = vpop.permute.xlu0 %596 }
 0x168   :  { %v921_v21 = vsel %vm911_vm14, %v906_v42, %v597_v5 }
 0x16b   :  { %v125_v53 = vpop.permute.xlu1 %124  ;;  %v779_v12 = vpop.permute.xlu0 %778 }
 0x16c   :  { %v979_v18 = vsel %vm971_vm4, %v964_v52, %v779_v12  ;;  %v820_v34 = vsel %vm806_vm7, %v2667_v45, %v125_v53  ;;  %v920_v45 = vsel %vm911_vm14, %v905_v17, %v595_v8  ;;  %vm1274_vm7 = vcmask 654336  }
 0x16d   :  { %1669 = vmatmul.mubr.msk.f32.gmra.mrb[6].mxu0 %vm1000_vm6, %v979_v18  ;;  %v935_v47 = vsel %vm926_vm15, %v920_v45, %v643_v40 }
 0x16f   :  { %v413_v15 = vpop.permute.xlu1 %412  ;;  %v196_v33 = vpop.permute.xlu0 %195 }
 0x170   :  { %v878_v46 = vsel %vm866_vm11, %v863_v32, %v413_v15  ;;  %v3108_v36 = vsel %vm821_vm8, %v819_v60, %v196_v33 }
 0x173   :  { %v645_v59 = vpop.permute.xlu1 %644  ;;  %v484_v24 = vpop.permute.xlu0 %483 }
 0x174   :  { %v936_v55 = vsel %vm926_vm15, %v921_v21, %v645_v59  ;;  %v892_v22 = vsel %vm881_vm12, %v3091_v61, %v484_v24 }
 0x177   :  { %v198_v20 = vpop.permute.xlu1 %197  ;;  %v689_v7 = vpop.permute.xlu0 %688 }
 0x178   :  { %v3113_v6 = vsel %vm821_vm8, %v820_v34, %v198_v20  ;;  %v950_v37 = vsel %vm941_vm1, %v935_v47, %v689_v7 }
 0x17b   :  { %v486_v49 = vpop.permute.xlu1 %485  ;;  %v3115_v9 = vpop.permute.xlu0 %268 }
 0x17c   :  { %v893_v61 = vsel %vm881_vm12, %v878_v46, %v486_v49  ;;  %v849_v46 = vsel %vm836_vm9, %v3108_v36, %v3115_v9 }
 0x17f   :  { %v691_v19 = vpop.permute.xlu1 %690  ;;  %v557_v2 = vpop.permute.xlu0 %556 }
 0x180   :  { %v951_v25 = vsel %vm941_vm1, %v936_v55, %v691_v19  ;;  %v907_v38 = vsel %vm896_vm13, %v892_v22, %v557_v2  ;;  %v3179_v55 = vld [vmem:[%s3315_s2] ss:$0 sm:$0xff] }
 0x183   :  { %v271_v35 = vpop.permute.xlu1 %270  ;;  %v735_v62 = vpop.permute.xlu0 %734 }
 0x184   :  { %v965_v63 = vsel %vm956_vm3, %v950_v37, %v735_v62  ;;  %v850_v7 = vsel %vm836_vm9, %v3113_v6, %v271_v35 }
 0x187   :  { %v559_v28 = vpop.permute.xlu1 %558  ;;  %v342_v3 = vpop.permute.xlu0 %341 }
 0x188   :  { %v908_v53 = vsel %vm896_vm13, %v893_v61, %v559_v28  ;;  %v864_v2 = vsel %vm851_vm10, %v849_v46, %v342_v3  ;;  %v1283_v46 = vld [vmem:[%s3316_s3 + $0x38] sm:$0xff] }
 0x18b   :  { %v737_v16 = vpop.permute.xlu1 %736  ;;  %v599_v23 = vpop.permute.xlu0 %598 }
 0x18c   :  { %v966_v13 = vsel %vm956_vm3, %v951_v25, %v737_v16  ;;  %v922_v39 = vsel %vm911_vm14, %v907_v38, %v599_v23 }
 0x18f   :  { %v344_v14 = vpop.permute.xlu1 %343  ;;  %v781_v50 = vpop.permute.xlu0 %780 }
 0x190   :  { %v980_v51 = vsel %vm971_vm4, %v965_v63, %v781_v50  ;;  %v865_v62 = vsel %vm851_vm10, %v850_v7, %v344_v14  ;;  %vm1298_vm10 = vcmask 982016  }
 0x191   :  { %1671 = vmatprep.mubr.msk.f32.mxu0 %vm1000_vm6, %v980_v51 }
 0x193   :  { %v601_v30 = vpop.permute.xlu1 %600  ;;  %v415_v54 = vpop.permute.xlu0 %414 }
 0x194   :  { %v923_v60 = vsel %vm911_vm14, %v908_v53, %v601_v30  ;;  %v879_v28 = vsel %vm866_vm11, %v864_v2, %v415_v54  ;;  %v1277_v53 = vld [vmem:[%s3316_s3 + $0x8] sm:$0xff] }
 0x197   :  { %v783_v11 = vpop.permute.xlu1 %782  ;;  %v647_v44 = vpop.permute.xlu0 %646 }
 0x198   :  { %v981_v26 = vsel %vm971_vm4, %v966_v13, %v783_v11  ;;  %v937_v32 = vsel %vm926_vm15, %v922_v39, %v647_v44 }
 0x199   :  { %1672 = vmatmul.mubr.msk.f32.gmra.mrb[8].mxu0 %vm1000_vm6, %v981_v26 }
 0x19b   :  { %v488_v10 = vpop.permute.xlu1 %487  ;;  %v417_v8 = vpop.permute.xlu0 %416 }
 0x19c   :  { %v880_v17 = vsel %vm866_vm11, %v865_v62, %v417_v8  ;;  %v894_v16 = vsel %vm881_vm12, %v879_v28, %v488_v10  ;;  %v1286_v62 = vld [vmem:[%s3316_s3 + $0x50] sm:$0xff]  ;;  %v1287_v28 = vld [vmem:[%s3316_s3 + $0x58] sm:$0xff]  ;;  %vm1831_vm11 = vmmov 1  }
 0x19f   :  { %v693_v41 = vpop.permute.xlu1 %692  ;;  %v649_v0 = vpop.permute.xlu0 %648 }
 0x1a0   :  { %v952_v57 = vsel %vm941_vm1, %v937_v32, %v693_v41  ;;  %v938_v15 = vsel %vm926_vm15, %v923_v60, %v649_v0 }
 0x1a3   :  { %v561_v29 = vpop.permute.xlu1 %560  ;;  %v490_v31 = vpop.permute.xlu0 %489 }
 0x1a4   :  { %v895_v23 = vsel %vm881_vm12, %v880_v17, %v490_v31  ;;  %v909_v45 = vsel %vm896_vm13, %v894_v16, %v561_v29  ;;  %vm3400_vm12 = vmmov %vm3397_vm0 }
 0x1a7   :  { %v739_v48 = vpop.permute.xlu1 %738  ;;  %v695_v56 = vpop.permute.xlu0 %694 }
 0x1a8   :  { %v967_v40 = vsel %vm956_vm3, %v952_v57, %v739_v48  ;;  %v953_v33 = vsel %vm941_vm1, %v938_v15, %v695_v56  ;;  %v1279_v15 = vld [vmem:[%s3316_s3 + $0x18] sm:$0xff] }
 0x1ab   :  { %v603_v4 = vpop.permute.xlu1 %602  ;;  %v563_v58 = vpop.permute.xlu0 %562 }
 0x1ac   :  { %v910_v36 = vsel %vm896_vm13, %v895_v23, %v563_v58  ;;  %v924_v35 = vsel %vm911_vm14, %v909_v45, %v603_v4  ;;  %v1753_v45 = vpack.c.bf16 %v1287_v28, %v1286_v62  ;;  %vm1760_vm13 = vmpackc.low %vm3400_vm12, %vm1831_vm11 }
 0x1af   :  { %v785_v5 = vpop.permute.xlu1 %784  ;;  %v741_v43 = vpop.permute.xlu0 %740 }
 0x1b0   :  { %v982_v27 = vsel %vm971_vm4, %v967_v40, %v785_v5  ;;  %v968_v59 = vsel %vm956_vm3, %v953_v33, %v741_v43 }
 0x1b1   :  { %v1661_v1 = vpop.f32.mrb[0].mxu0  ;;  %1674 = vmatprep.mubr.msk.f32.mxu0 %vm1000_vm6, %v982_v27 }
 0x1b2   :  { %v1112_v52 = vpop.f32.mrb[1].mxu0  ;;  %v1118_v25 = vadd.f32 %v1661_v1, %v3179_v55 }
 0x1b3   :  { %v651_v12 = vpop.permute.xlu1 %650  ;;  %v605_v18 = vpop.permute.xlu0 %604  ;;  %v1113_v13 = vadd.f32 %v3179_v55, %v1112_v52  ;;  %v1276_v52 = vld [vmem:[%s3316_s3] sm:$0xff] }
 0x1b4   :  { %v925_v3 = vsel %vm911_vm14, %v910_v36, %v605_v18  ;;  %v939_v47 = vsel %vm926_vm15, %v924_v35, %v651_v12  ;;  %v1182_v8 = vsel %vm941_vm1, %v1118_v25, -inf  ;;  %v1278_v12 = vld [vmem:[%s3316_s3 + $0x10] sm:$0xff]  ;;  %v1827_v18 = vmov 0.0|0.0   ;;  %v1288_v36 = vld [vmem:[%s3316_s3 + $0x60] sm:$0xff] }
 0x1b5   :  { %v1181_v0 = vsel %vm941_vm1, %v1113_v13, -inf  ;;  %1737 = vmatprep.subr.bf16.mxu1 %v1827_v18  ;;  %v1738_v60 = vpack.c.bf16 %v1277_v53, %v1276_v52  ;;  %v1741_v33 = vpack.c.bf16 %v1279_v15, %v1278_v12  ;;  %vm3401_vm14 = vcmask 1041408  }
 0x1b7   :  { %v653_v24 = vpop.permute.xlu1 %652  ;;  %v787_v34 = vpop.permute.xlu0 %786  ;;  %1739 = vmatpush3.bf16.msra.mxu1 %v1738_v60 }
 0x1b8   :  { %v983_v20 = vsel %vm971_vm4, %v968_v59, %v787_v34  ;;  %v940_v37 = vsel %vm926_vm15, %v925_v3, %v653_v24  ;;  %1740 = vmatprep.subr.bf16.mxu1 %v1827_v18  ;;  %v1280_v59 = vld [vmem:[%s3316_s3 + $0x20] sm:$0xff]  ;;  %v1281_v24 = vld [vmem:[%s3316_s3 + $0x28] sm:$0xff]  ;;  %vm3402_vm15 = vmmov %vm3401_vm14 }
 0x1b9   :  { %1675 = vmatmul.mubr.msk.f32.gmra.mrb[10].mxu0 %vm1000_vm6, %v983_v20  ;;  %v1744_v34 = vpack.c.bf16 %v1281_v24, %v1280_v59  ;;  %v1282_v20 = vld [vmem:[%s3316_s3 + $0x30] sm:$0xff] }
 0x1ba   :  { %v1747_v7 = vpack.c.bf16 %v1283_v46, %v1282_v20 }
 0x1bb   :  { %v699_v49 = vpop.permute.xlu1 %698  ;;  %v697_v19 = vpop.permute.xlu0 %696  ;;  %1742 = vmatpush3.bf16.msra.mxu1 %v1741_v33 }
 0x1bc   :  { %v955_v63 = vsel %vm941_vm1, %v940_v37, %v699_v49  ;;  %v954_v14 = vsel %vm941_vm1, %v939_v47, %v697_v19  ;;  %1743 = vmatprep.subr.bf16.mxu1 %v1827_v18  ;;  %v1284_v49 = vld [vmem:[%s3316_s3 + $0x40] sm:$0xff]  ;;  %v1285_v19 = vld [vmem:[%s3316_s3 + $0x48] sm:$0xff] }
 0x1bd   :  { %v1750_v2 = vpack.c.bf16 %v1285_v19, %v1284_v49 }
 0x1bf   :  { %v745_v9 = vpop.permute.xlu1 %744  ;;  %v743_v6 = vpop.permute.xlu0 %742  ;;  %1745 = vmatpush3.bf16.msra.mxu1 %v1744_v34 }
 0x1c0   :  { %v970_v50 = vsel %vm956_vm3, %v955_v63, %v745_v9  ;;  %v969_v51 = vsel %vm956_vm3, %v954_v14, %v743_v6  ;;  %vm1187_vm3 = vcmask 324608   ;;  %1746 = vmatprep.subr.bf16.mxu1 %v1827_v18  ;;  %v1289_v9 = vld [vmem:[%s3316_s3 + $0x68] sm:$0xff] }
 0x1c1   :  { %v1756_v3 = vpack.c.bf16 %v1289_v9, %v1288_v36 }
 0x1c3   :  { %v791_v42 = vpop.permute.xlu1 %790  ;;  %v789_v30 = vpop.permute.xlu0 %788  ;;  %1748 = vmatpush3.bf16.msra.mxu1 %v1747_v7 }
 0x1c4   :  { %v985_v54 = vsel %vm971_vm4, %v970_v50, %v791_v42  ;;  %v984_v21 = vsel %vm971_vm4, %v969_v51, %v789_v30  ;;  %1749 = vmatprep.subr.bf16.mxu1 %v1827_v18  ;;  %vm1258_vm4 = vcmask 1041409  }
 0x1c5   :  { %1677 = vmatprep.mubr.msk.f32.mxu0 %vm1000_vm6, %v984_v21 }
 0x1c6   :  { %1678 = vmatmul.mubr.msk.f32.gmra.mrb[12].mxu0 %vm1000_vm6, %v985_v54  ;;  %vm1829_vm6 = vmmov 0  }
 0x1c7   :  { %1751 = vmatpush3.bf16.msra.mxu1 %v1750_v2 }
 0x1c8   :  { %1752 = vmatprep.subr.bf16.mxu1 %v1827_v18 }
 0x1cb   :  { %1754 = vmatpush3.bf16.msra.mxu1 %v1753_v45 }
 0x1cc   :  { %1755 = vmatprep.subr.bf16.mxu1 %v1827_v18 }
 0x1cf   :  { %1757 = vmatpush3.bf16.msra.mxu1 %v1756_v3 }
 0x1e1   :  { %v1664_v11 = vpop.f32.mrb[2].mxu0 }
 0x1e2   :  { %v1128_v44 = vadd.f32 %v1664_v11, %v3179_v55  ;;  %v1122_v26 = vpop.f32.mrb[3].mxu0 }
 0x1e3   :  { %v1123_v10 = vadd.f32 %v3179_v55, %v1122_v26 }
 0x1e4   :  { %v1185_v41 = vsel %vm941_vm1, %v1128_v44, -inf }
 0x1e5   :  { %v1186_v29 = vmax.f32 %v1182_v8, %v1185_v41  ;;  %v1183_v31 = vsel %vm941_vm1, %v1123_v10, -inf }
 0x1e6   :  { %v1184_v48 = vmax.f32 %v1181_v0, %v1183_v31 }
 0x211   :  { %v1667_v56 = vpop.f32.mrb[4].mxu0 }
 0x212   :  { %v1138_v22 = vadd.f32 %v1667_v56, %v3179_v55  ;;  %v1132_v38 = vpop.f32.mrb[5].mxu0 }
 0x213   :  { %v1133_v4 = vadd.f32 %v3179_v55, %v1132_v38 }
 0x214   :  { %v1214_v58 = vsel %vm1187_vm3, %v1138_v22, -inf  ;;  %v1234_v39 = vsel %vm941_vm1, %v1138_v22, -inf }
 0x215   :  { %v1215_v32 = vmax.f32 %v1186_v29, %v1214_v58  ;;  %v1235_v57 = vmax.f32 %v1185_v41, %v1234_v39  ;;  %v1188_v40 = vsel %vm1187_vm3, %v1133_v4, -inf  ;;  %v1212_v5 = vsel %vm941_vm1, %v1133_v4, -inf }
 0x216   :  { %v1189_v43 = vmax.f32 %v1184_v48, %v1188_v40  ;;  %v1213_v27 = vmax.f32 %v1183_v31, %v1212_v5 }
 0x218   :  { %v1190_v1 = vmax.f32 %v1189_v43, %v1186_v29  ;;  %v3195_v61 = vmax.f32 %v1215_v32, %v1213_v27 }
 0x21a   :  { %v1191_v54 = vrot.slane %v1190_v1, 4  ;;  %v1217_v39 = vrot.slane %v3195_v61, 4 }
 0x21c   :  { %v1192_v26 = vmax.f32 %v1190_v1, %v1191_v54  ;;  %v1218_v53 = vmax.f32 %v3195_v61, %v1217_v39  ;;  %v1597_v39 = vld [vmem:[%s3319_s6] ss:$0 sm:$0xff]  ;;  %s1832_s6 = smov [#allocation2]  }
 0x21e   :  { %v1193_v56 = vrot.slane %v1192_v26, 2  ;;  %v1219_v49 = vrot.slane %v1218_v53, 2 }
 0x220   :  { %v1194_v4 = vmax.f32 %v1192_v26, %v1193_v56  ;;  %v1378_v26 = vld [vmem:[%s3318_s5] sm:$0xff] }
 0x222   :  { %v1195_v52 = vrot.slane %v1194_v4, 1 }
 0x224   :  { %v1196_v46 = vmax.f32 %v1194_v4, %v1195_v52 }
 0x240   :  { %v1670_v17 = vpop.f32.mrb[6].mxu0 }
 0x241   :  { %v1142_v16 = vpop.f32.mrb[7].mxu0  ;;  %v1148_v37 = vadd.f32 %v1670_v17, %v3179_v55  ;;  %v1290_v17 = vld [vmem:[%s3316_s3 + $0x70] sm:$0xff]  ;;  %s1830_s3 = smov 80  }
 0x242   :  { %v1143_v23 = vadd.f32 %v3179_v55, %v1142_v16  ;;  %v1828_v16 = vmov 0.0  }
 0x243   :  { %v1197_v51 = vsel %vm941_vm1, %v1148_v37, -inf  ;;  %1708 = vmatprep.subr.mxu1 %v1828_v16  ;;  %1710 = vmatprep.mubr.msk.f32.mxu1 %vm1829_vm6, %v1828_v16 }
 0x244   :  { %v1236_v6 = vsel %vm1187_vm3, %v1143_v23, -inf  ;;  %v1220_v23 = vmax.f32 %v1218_v53, %v1219_v49  ;;  %1709 = vmatpush3.msra.mxu1 %v1290_v17  ;;  %v1601_v53 = vld [vmem:[%s3321_s8] ss:$0 sm:$0xff] }
 0x245   :  { %v1237_v35 = vmax.f32 %v1213_v27, %v1236_v6  ;;  %1758 = vmatprep.subr.bf16.mxu1 %v1827_v18 }
 0x247   :  { %v1238_v47 = vmax.f32 %v1237_v35, %v1235_v57 }
 0x249   :  { %v1239_v32 = vrot.slane %v1238_v47, 4 }
 0x24b   :  { %v1240_v12 = vmax.f32 %v1238_v47, %v1239_v32 }
 0x24d   :  { %v1241_v19 = vrot.slane %v1240_v12, 2 }
 0x24f   :  { %v1242_v45 = vmax.f32 %v1240_v12, %v1241_v19 }
 0x251   :  { %v1243_v37 = vrot.slane %v1242_v45, 1 }
 0x26c   :  { %v1673_v63 = vpop.f32.mrb[8].mxu0 }
 0x26d   :  { %v1158_v14 = vadd.f32 %v1673_v63, %v3179_v55  ;;  %v1152_v50 = vpop.f32.mrb[9].mxu0  ;;  %v1221_v63 = vrot.slane %v1220_v23, 1 }
 0x26e   :  { %v1153_v21 = vadd.f32 %v3179_v55, %v1152_v50 }
 0x26f   :  { %v1199_v42 = vsel %vm941_vm1, %v1158_v14, -inf }
 0x270   :  { %v1200_v30 = vmax.f32 %v1197_v51, %v1199_v42  ;;  %v1198_v41 = vsel %vm941_vm1, %v1153_v21, -inf  ;;  %v1244_v51 = vmax.f32 %v1242_v45, %v1243_v37 }
 0x28c   :  { %v1676_v25 = vpop.f32.mrb[10].mxu0 }
 0x28d   :  { %v1168_v13 = vadd.f32 %v1676_v25, %v3179_v55  ;;  %v1162_v11 = vpop.f32.mrb[11].mxu0 }
 0x28e   :  { %v1163_v44 = vadd.f32 %v3179_v55, %v1162_v11 }
 0x28f   :  { %v1203_v10 = vsel %vm1187_vm3, %v1168_v13, -inf  ;;  %v1223_v8 = vsel %vm941_vm1, %v1168_v13, -inf }
 0x290   :  { %v1204_v0 = vmax.f32 %v1200_v30, %v1203_v10  ;;  %v1224_v29 = vmax.f32 %v1199_v42, %v1223_v8  ;;  %v1201_v31 = vsel %vm941_vm1, %v1163_v44, -inf  ;;  %v1222_v30 = vmax.f32 %v1220_v23, %v1221_v63  ;;  %v1379_v10 = vld [vmem:[%s3318_s5 + $0x8] sm:$0xf] }
 0x291   :  { %v1202_v48 = vmax.f32 %v1198_v41, %v1201_v31  ;;  %v1759_v8 = vpack.c.bf16 %v1379_v10, %v1378_v26  ;;  %v1594_v41 = vld [vmem:[%s3317_s4] ss:$0 sm:$0xff] }
 0x293   :  { %v1205_v22 = vmax.f32 %v1204_v0, %v1202_v48 }
 0x295   :  { %v1206_v38 = vrot.slane %v1205_v22, 4 }
 0x297   :  { %v1207_v58 = vmax.f32 %v1205_v22, %v1206_v38 }
 0x299   :  { %v1208_v57 = vrot.slane %v1207_v58, 2  ;;  %v1679_v40 = vpop.f32.mrb[12].mxu0 }
 0x29a   :  { %v1178_v5 = vadd.f32 %v1679_v40, %v3179_v55  ;;  %v1172_v43 = vpop.f32.mrb[13].mxu0 }
 0x29b   :  { %v1209_v27 = vmax.f32 %v1207_v58, %v1208_v57  ;;  %v1173_v1 = vadd.f32 %v3179_v55, %v1172_v43  ;;  %v1469_v58 = vld [vmem:[%s3320_s7] sm:$0xff]  ;;  %s1570_s7 = sshll.u32 %s1832_s6, 4  ;;  %s1571_s7 = int_to_ptr.vmem [resolvable:$true] %s1570_s7 }
 0x29c   :  { %v1247_v60 = vsel %vm1187_vm3, %v1178_v5, -inf  ;;  %s1791_s8 = scalar_lea.vmem %s1571_s7, 32  ;;  %p1796_p1 = scmp.lt.s32.totalorder %s1571_s7, %s1571_s7 }
 0x29d   :  { %v1248_v15 = vmax.f32 %v1224_v29, %v1247_v60  ;;  %v1225_v33 = vsel %vm1187_vm3, %v1173_v1, -inf  ;;  %v1245_v59 = vsel %vm941_vm1, %v1173_v1, -inf  ;;  %v1210_v24 = vrot.slane %v1209_v27, 1  ;;  %p1792_p0 = scmp.ne.s32.totalorder %s1571_s7, %s1791_s8  ;;  %p1797_p2 = scmp.lt.s32.totalorder %s1791_s8, %s1791_s8 }
 0x29e   :  { %v1226_v34 = vmax.f32 %v1202_v48, %v1225_v33  ;;  %v1246_v20 = vmax.f32 %v1201_v31, %v1245_v59 }
 0x29f   :  { %v1211_v7 = vmax.f32 %v1209_v27, %v1210_v24  ;;  %p1798_p3 = por %p1797_p2, %p1796_p1 }
 0x2a0   :  { %v1227_v55 = vmax.f32 %v1226_v34, %v1224_v29  ;;  %v1249_v2 = vmax.f32 %v1248_v15, %v1246_v20 }
 0x2a1   :  { %v1259_v61 = vsel %vm1258_vm4, %v1211_v7, %v1196_v46  ;;  %p1799_p4 = pnand %p1798_p3, %p1792_p0 }
 0x2a2   :  { %v1228_v62 = vrot.slane %v1227_v55, 4  ;;  %v1250_v28 = vrot.slane %v1249_v2, 4 }
 0x2a4   :  { %v1229_v36 = vmax.f32 %v1227_v55, %v1228_v62  ;;  %v1251_v9 = vmax.f32 %v1249_v2, %v1250_v28 }
 0x2a6   :  { %v1230_v6 = vrot.slane %v1229_v36, 2  ;;  %v1252_v35 = vrot.slane %v1251_v9, 2 }
 0x2a8   :  { %v1231_v3 = vmax.f32 %v1229_v36, %v1230_v6  ;;  %v1253_v47 = vmax.f32 %v1251_v9, %v1252_v35 }
 0x2aa   :  { %v1254_v14 = vrot.slane %v1253_v47, 1  ;;  %v1232_v50 = vrot.slane %v1231_v3, 1 }
 0x2ac   :  { %v1255_v42 = vmax.f32 %v1253_v47, %v1254_v14  ;;  %v1233_v54 = vmax.f32 %v1231_v3, %v1232_v50 }
 0x2ae   :  { %v1269_v21 = vsel %vm1258_vm4, %v1255_v42, %v1244_v51  ;;  %v1263_v25 = vsel %vm1258_vm4, %v1233_v54, %v1222_v30 }
 0x2af   :  { %1270 = vrot.lane.b32.xlu1 %v1269_v21, %s1830_s3  ;;  %1264 = vrot.lane.b32.xlu0 %v1263_v25, %s1824_s11 }
 0x321   :  { %v1271_v18 = vpop.permute.xlu1 %1270  ;;  %v1265_v13 = vpop.permute.xlu0 %1264 }
 0x322   :  { %v1273_v11 = vsel %vm941_vm1, %v1259_v61, %v1265_v13 }
 0x323   :  { %v1275_v44 = vsel %vm1274_vm7, %v1273_v11, %v1271_v18 }
 0x324   :  { %1711 = vmatmul.mubr.msk.f32.vlgmr.msra.gmra.mrb[0].mxu1 %vm1298_vm10, %v1275_v44 }
 0x325   :  { %1717 = vmatprep.mubr.msk.f32.mxu1 %vm1829_vm6, %v1828_v16  ;;  %1761 = vmatpush3.bf16.msk.msra.mxu1 %vm1760_vm13, %v1759_v8 }
 0x326   :  { %1720 = vmatprep.subr.mxu1 %v1828_v16 }
 0x3f7   :  { %v1368_v0 = vpop.f32.mrb[0].mxu1 }
 0x3f8   :  { %v1369_v29 = vadd.f32 %v1594_v41, %v1368_v0  ;;  %v1712_v31 = vpop.f32.mrb[1].mxu1 }
 0x3fa   :  { %v1373_v48 = vmin.f32 %v1369_v29, 0.0  ;;  %vm1372_vm1 = vcmp.gt.f32.partialorder %v1369_v29, 0.0 }
 0x3fc   :  { %v1374_v56 = vmul.f32 1.442695, %v1373_v48 }
 0x3fe   :  { %1780 = vpow2.f32 %v1374_v56 }
 0x408   :  { %v1781_v22 = vpop.eup %1780 }
 0x409   :  { %v1596_v38 = vadd.f32 -1.0, %v1781_v22 }
 0x40b   :  { %v1377_v4 = vsel %vm1372_vm1, %v1369_v29, %v1596_v38 }
 0x40c   :  { %1718 = vmatmul.mubr.msk.f32.vlgmr.msra.gmra.mrb[2].mxu1 %vm836_vm9, %v1377_v4 }
 0x40d   :  { %1722 = vmatprep.mubr.msk.f32.mxu1 %vm1829_vm6, %v1828_v16  ;;  %1721 = vmatpush3.msra.mxu1 %v1469_v58 }
 0x4df   :  { %v1459_v32 = vpop.f32.mrb[2].mxu1 }
 0x4e0   :  { %v1460_v57 = vadd.f32 %v1597_v39, %v1459_v32  ;;  %v1719_v40 = vpop.f32.mrb[3].mxu1 }
 0x4e2   :  { %v1464_v5 = vmin.f32 %v1460_v57, 0.0  ;;  %vm1463_vm9 = vcmp.gt.f32.partialorder %v1460_v57, 0.0 }
 0x4e4   :  { %v1465_v43 = vmul.f32 1.442695, %v1464_v5 }
 0x4e6   :  { %1782 = vpow2.f32 %v1465_v43 }
 0x4f0   :  { %v1783_v27 = vpop.eup %1782 }
 0x4f1   :  { %v1600_v1 = vadd.f32 -1.0, %v1783_v27 }
 0x4f3   :  { %v1468_v52 = vsel %vm1463_vm9, %v1460_v57, %v1600_v1 }
 0x4f4   :  { %1723 = vmatmul.mubr.msk.f32.vlgmr.msra.gmra.mrb[4].mxu1 %vm821_vm8, %v1468_v52 }
 0x5c7   :  { %v1546_v12 = vpop.f32.mrb[4].mxu1 }
 0x5c8   :  { %v1547_v60 = vadd.f32 %v1601_v53, %v1546_v12  ;;  %v1724_v15 = vpop.f32.mrb[5].mxu1 }
 0x5ca   :  { %v1550_v33 = vsel %vm3401_vm14, %v1547_v60, -inf }
 0x5cb   :  { %1551 = vmax.xlane.f32.xlu0 %v1550_v33 }
 0x658   :  { %v1552_v59 = vpop.xlane.xlu0 %1551 }
 0x659   :  { %v1553_v24 = vsub.f32 %v1547_v60, %v1552_v59 }
 0x65b   :  { %v1554_v34 = vmul.f32 1.442695, %v1553_v24 }
 0x65d   :  { %1784 = vpow2.f32 %v1554_v34 }
 0x667   :  { %v1785_v20 = vpop.eup %1784 }
 0x668   :  { %v1556_v46 = vsel %vm3402_vm15, %v1785_v20, 0.0 }
 0x669   :  { %1557 = vadd.xlane.f32.xlu1 %v1556_v46 }
 0x6f6   :  { %v1558_v7 = vpop.xlane.xlu1 %1557 }
 0x6f7   :  { %1786 = vlog2.f32 %v1558_v7 }
 0x701   :  { %v1787_v49 = vpop.eup %1786 }
 0x702   :  { %v1560_v19 = vmul.f32 0.6931472, %v1787_v49 }
 0x704   :  { %v1561_v55 = vadd.f32 %v1560_v19, %v1552_v59 }
 0x706   :  { %v1562_v2 = vsub.f32 %v1547_v60, %v1561_v55 }
 0x708   :  { %1563 = vst [vmem:[#allocation2] sm:$0x3] %v1562_v2 }
 0x709   :  { %1802 = shalt.err (!%p1799_p4)
}
 0x70a   :  { %s1803_s24 = scalar_lea.hbm %s3322_s9, 32 }
 0x70b   :  { %p1804_p5 = scmp.ne.s32.totalorder %s3322_s9, %s1803_s24  ;;  %p1807_p6 = scmp.lt.u32.totalorder %s1803_s24, %s3322_s9 }
 0x70d   :  { %p1809_p7 = pnand %p1807_p6, %p1804_p5 }
 0x70f   :  { %1812 = shalt.err (!%p1809_p7)
}
 0x710   :  { %1573 = dma.vmem_to_hbm [thread:$0]  %s1571_s7, 32, %s3322_s9, [#allocation3]  }
 0x711   :  { %1813 = dma.done.wait [#allocation3], 32  }
 0x712   :  { %1814 = vsyncadd [#allocation3], 4294967264 }
 0x713   :  { %1577 = vsyncpa [#allocation3], 1 }

</bundles_post_ra>
